<compile_context>
chip_gen: v7x
topology: tpu7x:2x2x1
jax: 0.10.0
libtpu: 0.0.40
codegen_flags: <defaults>
</compile_context>

<pallas_src>
import jax
import jax.numpy as jnp
from jax.experimental import pallas as pl
from jax.experimental.pallas import tpu as pltpu

C1 = 0.01 ** 2
C2 = 0.03 ** 2


def ssim_kernel(x_ref, y_ref, m_ref, o_ref):
    # Refs are (B, H, W) *unpadded* planes; the reflect halo is rebuilt here.
    H = x_ref.shape[1]
    W = x_ref.shape[2]

    def pool3(a):
        # Separable 3x3 mean with the 1-px reflection pad fused in (per plane).
        # Lane (W) pass: columns j-1, j, j+1 with reflection at the edges
        # (col -1 -> col 1, col W -> col W-2), exactly like ReflectionPad2d(1).
        left = jnp.concatenate([a[:, :, 1:2], a[:, :, :W - 1]], axis=2)
        right = jnp.concatenate([a[:, :, 1:], a[:, :, W - 2:W - 1]], axis=2)
        cs = a + left + right
        # Sublane (H) pass on the column sums, same reflection rule.
        up = jnp.concatenate([cs[:, 1:2, :], cs[:, :H - 1, :]], axis=1)
        down = jnp.concatenate([cs[:, 1:, :], cs[:, H - 2:H - 1, :]], axis=1)
        return (cs + up + down) * (1.0 / 9.0)

    x = x_ref[...].astype(jnp.float32)
    y = y_ref[...].astype(jnp.float32)

    mu_x = pool3(x)
    mu_y = pool3(y)
    # Pool each product immediately so only one product plane is live at a time.
    sigma_x = pool3(x * x) - mu_x * mu_x
    sigma_y = pool3(y * y) - mu_y * mu_y
    sigma_xy = pool3(x * y) - mu_x * mu_y

    ssim_n = (2.0 * mu_x * mu_y + C1) * (2.0 * sigma_xy + C2)
    ssim_d = (mu_x * mu_x + mu_y * mu_y + C1) * (sigma_x + sigma_y + C2)
    score = jnp.clip((1.0 - ssim_n / ssim_d) * 0.5, 0.0, 1.0)

    ssim_mask = pool3(m_ref[...].astype(jnp.float32))
    o_ref[...] = (ssim_mask * score).astype(o_ref.dtype)


def _planes_per_step(num_planes, plane_bytes, vmem_limit):
    # VMEM working set per step: ~2x double-buffered (3 inputs + 1 output)
    # blocks + ~10 live f32 temporaries inside the kernel -> budget ~20 blocks.
    b_cap = max(1, int(vmem_limit * 0.8) // (20 * plane_bytes))
    divisors = [b for b in range(1, num_planes + 1) if num_planes % b == 0]
    fits = [b for b in divisors if b <= b_cap]
    # Prefer >= 2 grid steps so both TensorCores get work on megacore parts.
    pref = [b for b in fits if num_planes // b >= 2]
    if pref:
        return max(pref)
    if fits:
        return max(fits)
    return 1


def ssim_pallas(x, y, mask):
    # x, y, mask: (N, C, H, W). Math is done in f32; output keeps x.dtype.
    N, Cc, H, W = x.shape
    NC = N * Cc
    x3 = x.reshape(NC, H, W)
    y3 = y.reshape(NC, H, W)
    m3 = mask.reshape(NC, H, W)

    try:
        vmem_cap = int(pltpu.get_tpu_info().vmem_capacity_bytes)
    except Exception:
        vmem_cap = 64 * 1024 * 1024   # conservative fallback (v7x per-core VMEM)
    vmem_limit = int(vmem_cap * 0.7)

    B = _planes_per_step(NC, H * W * 4, vmem_limit)
    grid = (NC // B,)

    in_spec = pl.BlockSpec((B, H, W), lambda i: (i, 0, 0))
    out_spec = pl.BlockSpec((B, H, W), lambda i: (i, 0, 0))

    nelem = NC * H * W
    cost = pl.CostEstimate(
        flops=60 * nelem,
        transcendentals=nelem,                       # the SSIM_n / SSIM_d divide
        bytes_accessed=4 * nelem * x.dtype.itemsize,  # 3 inputs + 1 output
    )

    out = pl.pallas_call(
        ssim_kernel,
        out_shape=jax.ShapeDtypeStruct((NC, H, W), x.dtype),
        grid_spec=pl.GridSpec(
            grid=grid,
            in_specs=[in_spec, in_spec, in_spec],
            out_specs=out_spec,
        ),
        compiler_params=pltpu.CompilerParams(
            dimension_semantics=("parallel",),
            vmem_limit_bytes=vmem_limit,
        ),
        cost_estimate=cost,
    )(x3, y3, m3)
    return out.reshape(N, Cc, H, W)


def ssim_reference(x, y, mask):
    # Pure-JAX reference mirroring the PyTorch module (explicit pad + 9-tap pool).
    pad = ((0, 0), (0, 0), (1, 1), (1, 1))
    xp = jnp.pad(x, pad, mode="reflect")
    yp = jnp.pad(y, pad, mode="reflect")
    mp = jnp.pad(mask, pad, mode="reflect")

    def pool(a):
        _, _, Hp, Wp = a.shape
        H, W = Hp - 2, Wp - 2
        acc = jnp.zeros(a.shape[:2] + (H, W), dtype=a.dtype)
        for di in range(3):
            for dj in range(3):
                acc = acc + a[:, :, di:di + H, dj:dj + W]
        return acc / 9.0

    mu_x = pool(xp)
    mu_y = pool(yp)
    sigma_x = pool(xp ** 2) - mu_x ** 2
    sigma_y = pool(yp ** 2) - mu_y ** 2
    sigma_xy = pool(xp * yp) - mu_x * mu_y
    n = (2 * mu_x * mu_y + C1) * (2 * sigma_xy + C2)
    d = (mu_x ** 2 + mu_y ** 2 + C1) * (sigma_x + sigma_y + C2)
    return pool(mp) * jnp.clip((1 - n / d) / 2, 0.0, 1.0)


if __name__ == "__main__":
    key = jax.random.PRNGKey(0)
    kx, ky, km, k2 = jax.random.split(key, 4)

    # Main test: batch=2, channels=4, spatial 16x16 (B=4 planes/step, grid=2).
    N, Cc, H, W = 2, 4, 16, 16
    x = jax.random.uniform(kx, (N, Cc, H, W), dtype=jnp.float32)
    y = jax.random.uniform(ky, (N, Cc, H, W), dtype=jnp.float32)
    mask = (jax.random.uniform(km, (N, Cc, H, W)) > 0.3).astype(jnp.float32)

    out = jax.block_until_ready(ssim_pallas(x, y, mask))
    ref = ssim_reference(x, y, mask)
    assert out.shape == (N, Cc, H, W)
    assert jnp.allclose(out, ref, atol=1e-5, rtol=1e-5), float(
        jnp.max(jnp.abs(out - ref)))

    # Second, non-square / odd-extent shape to exercise the B selection path.
    kx2, ky2, km2 = jax.random.split(k2, 3)
    N2, CH2, H2, W2 = 1, 3, 24, 40
    x2 = jax.random.uniform(kx2, (N2, CH2, H2, W2), dtype=jnp.float32)
    y2 = jax.random.uniform(ky2, (N2, CH2, H2, W2), dtype=jnp.float32)
    m2 = (jax.random.uniform(km2, (N2, CH2, H2, W2)) > 0.5).astype(jnp.float32)
    out2 = jax.block_until_ready(ssim_pallas(x2, y2, m2))
    ref2 = ssim_reference(x2, y2, m2)
    assert jnp.allclose(out2, ref2, atol=1e-5, rtol=1e-5), float(
        jnp.max(jnp.abs(out2 - ref2)))

    print("KERNEL_OK")
</pallas_src>

<mosaic_0001>
module attributes {stable_mosaic.version = 11 : i64} {
  func.func @ssim_kernel(%arg0: i32, %arg1: memref<4x16x16xf32, #tpu.memory_space<vmem>>, %arg2: memref<4x16x16xf32, #tpu.memory_space<vmem>>, %arg3: memref<4x16x16xf32, #tpu.memory_space<vmem>>, %arg4: memref<4x16x16xf32, #tpu.memory_space<vmem>>) attributes {dimension_semantics = [#tpu.dimension_semantics<parallel>], iteration_bounds = array<i64: 2>, scalar_prefetch = 0 : i64, scratch_operands = 0 : i64, tpu.core_type = #tpu.core_type<tc>, window_params = [{transform_indices = @transform_0, window_bounds = array<i64: 4, 16, 16>}, {transform_indices = @transform_1, window_bounds = array<i64: 4, 16, 16>}, {transform_indices = @transform_2, window_bounds = array<i64: 4, 16, 16>}, {transform_indices = @transform_3, window_bounds = array<i64: 4, 16, 16>}]} {
    %c0 = arith.constant 0 : index
    %c0_0 = arith.constant 0 : index
    %c0_1 = arith.constant 0 : index
    %0 = vector.load %arg1[%c0, %c0_0, %c0_1] : memref<4x16x16xf32, #tpu.memory_space<vmem>>, vector<4x16x16xf32>
    %c0_2 = arith.constant 0 : index
    %c0_3 = arith.constant 0 : index
    %c0_4 = arith.constant 0 : index
    %1 = vector.load %arg2[%c0_2, %c0_3, %c0_4] : memref<4x16x16xf32, #tpu.memory_space<vmem>>, vector<4x16x16xf32>
    %2 = vector.extract_strided_slice %0 {offsets = [0, 0, 1], sizes = [4, 16, 1], strides = [1, 1, 1]} : vector<4x16x16xf32> to vector<4x16x1xf32>
    %3 = vector.extract_strided_slice %0 {offsets = [0, 0, 0], sizes = [4, 16, 15], strides = [1, 1, 1]} : vector<4x16x16xf32> to vector<4x16x15xf32>
    %4 = tpu.concatenate %2, %3 in 2 : vector<4x16x1xf32>, vector<4x16x15xf32> -> vector<4x16x16xf32>
    %5 = vector.extract_strided_slice %0 {offsets = [0, 0, 1], sizes = [4, 16, 15], strides = [1, 1, 1]} : vector<4x16x16xf32> to vector<4x16x15xf32>
    %6 = vector.extract_strided_slice %0 {offsets = [0, 0, 14], sizes = [4, 16, 1], strides = [1, 1, 1]} : vector<4x16x16xf32> to vector<4x16x1xf32>
    %7 = tpu.concatenate %5, %6 in 2 : vector<4x16x15xf32>, vector<4x16x1xf32> -> vector<4x16x16xf32>
    %8 = arith.addf %0, %4 : vector<4x16x16xf32>
    %9 = arith.addf %8, %7 : vector<4x16x16xf32>
    %10 = vector.extract_strided_slice %9 {offsets = [0, 1, 0], sizes = [4, 1, 16], strides = [1, 1, 1]} : vector<4x16x16xf32> to vector<4x1x16xf32>
    %11 = vector.extract_strided_slice %9 {offsets = [0, 0, 0], sizes = [4, 15, 16], strides = [1, 1, 1]} : vector<4x16x16xf32> to vector<4x15x16xf32>
    %12 = tpu.concatenate %10, %11 in 1 : vector<4x1x16xf32>, vector<4x15x16xf32> -> vector<4x16x16xf32>
    %13 = vector.extract_strided_slice %9 {offsets = [0, 1, 0], sizes = [4, 15, 16], strides = [1, 1, 1]} : vector<4x16x16xf32> to vector<4x15x16xf32>
    %14 = vector.extract_strided_slice %9 {offsets = [0, 14, 0], sizes = [4, 1, 16], strides = [1, 1, 1]} : vector<4x16x16xf32> to vector<4x1x16xf32>
    %15 = tpu.concatenate %13, %14 in 1 : vector<4x15x16xf32>, vector<4x1x16xf32> -> vector<4x16x16xf32>
    %16 = arith.addf %9, %12 : vector<4x16x16xf32>
    %17 = arith.addf %16, %15 : vector<4x16x16xf32>
    %cst = arith.constant 0.111111112 : f32
    %18 = vector.broadcast %cst : f32 to vector<4x16x16xf32>
    %19 = arith.mulf %17, %18 : vector<4x16x16xf32>
    %20 = vector.extract_strided_slice %1 {offsets = [0, 0, 1], sizes = [4, 16, 1], strides = [1, 1, 1]} : vector<4x16x16xf32> to vector<4x16x1xf32>
    %21 = vector.extract_strided_slice %1 {offsets = [0, 0, 0], sizes = [4, 16, 15], strides = [1, 1, 1]} : vector<4x16x16xf32> to vector<4x16x15xf32>
    %22 = tpu.concatenate %20, %21 in 2 : vector<4x16x1xf32>, vector<4x16x15xf32> -> vector<4x16x16xf32>
    %23 = vector.extract_strided_slice %1 {offsets = [0, 0, 1], sizes = [4, 16, 15], strides = [1, 1, 1]} : vector<4x16x16xf32> to vector<4x16x15xf32>
    %24 = vector.extract_strided_slice %1 {offsets = [0, 0, 14], sizes = [4, 16, 1], strides = [1, 1, 1]} : vector<4x16x16xf32> to vector<4x16x1xf32>
    %25 = tpu.concatenate %23, %24 in 2 : vector<4x16x15xf32>, vector<4x16x1xf32> -> vector<4x16x16xf32>
    %26 = arith.addf %1, %22 : vector<4x16x16xf32>
    %27 = arith.addf %26, %25 : vector<4x16x16xf32>
    %28 = vector.extract_strided_slice %27 {offsets = [0, 1, 0], sizes = [4, 1, 16], strides = [1, 1, 1]} : vector<4x16x16xf32> to vector<4x1x16xf32>
    %29 = vector.extract_strided_slice %27 {offsets = [0, 0, 0], sizes = [4, 15, 16], strides = [1, 1, 1]} : vector<4x16x16xf32> to vector<4x15x16xf32>
    %30 = tpu.concatenate %28, %29 in 1 : vector<4x1x16xf32>, vector<4x15x16xf32> -> vector<4x16x16xf32>
    %31 = vector.extract_strided_slice %27 {offsets = [0, 1, 0], sizes = [4, 15, 16], strides = [1, 1, 1]} : vector<4x16x16xf32> to vector<4x15x16xf32>
    %32 = vector.extract_strided_slice %27 {offsets = [0, 14, 0], sizes = [4, 1, 16], strides = [1, 1, 1]} : vector<4x16x16xf32> to vector<4x1x16xf32>
    %33 = tpu.concatenate %31, %32 in 1 : vector<4x15x16xf32>, vector<4x1x16xf32> -> vector<4x16x16xf32>
    %34 = arith.addf %27, %30 : vector<4x16x16xf32>
    %35 = arith.addf %34, %33 : vector<4x16x16xf32>
    %cst_5 = arith.constant 0.111111112 : f32
    %36 = vector.broadcast %cst_5 : f32 to vector<4x16x16xf32>
    %37 = arith.mulf %35, %36 : vector<4x16x16xf32>
    %38 = arith.mulf %0, %0 : vector<4x16x16xf32>
    %39 = vector.extract_strided_slice %38 {offsets = [0, 0, 1], sizes = [4, 16, 1], strides = [1, 1, 1]} : vector<4x16x16xf32> to vector<4x16x1xf32>
    %40 = vector.extract_strided_slice %38 {offsets = [0, 0, 0], sizes = [4, 16, 15], strides = [1, 1, 1]} : vector<4x16x16xf32> to vector<4x16x15xf32>
    %41 = tpu.concatenate %39, %40 in 2 : vector<4x16x1xf32>, vector<4x16x15xf32> -> vector<4x16x16xf32>
    %42 = vector.extract_strided_slice %38 {offsets = [0, 0, 1], sizes = [4, 16, 15], strides = [1, 1, 1]} : vector<4x16x16xf32> to vector<4x16x15xf32>
    %43 = vector.extract_strided_slice %38 {offsets = [0, 0, 14], sizes = [4, 16, 1], strides = [1, 1, 1]} : vector<4x16x16xf32> to vector<4x16x1xf32>
    %44 = tpu.concatenate %42, %43 in 2 : vector<4x16x15xf32>, vector<4x16x1xf32> -> vector<4x16x16xf32>
    %45 = arith.addf %38, %41 : vector<4x16x16xf32>
    %46 = arith.addf %45, %44 : vector<4x16x16xf32>
    %47 = vector.extract_strided_slice %46 {offsets = [0, 1, 0], sizes = [4, 1, 16], strides = [1, 1, 1]} : vector<4x16x16xf32> to vector<4x1x16xf32>
    %48 = vector.extract_strided_slice %46 {offsets = [0, 0, 0], sizes = [4, 15, 16], strides = [1, 1, 1]} : vector<4x16x16xf32> to vector<4x15x16xf32>
    %49 = tpu.concatenate %47, %48 in 1 : vector<4x1x16xf32>, vector<4x15x16xf32> -> vector<4x16x16xf32>
    %50 = vector.extract_strided_slice %46 {offsets = [0, 1, 0], sizes = [4, 15, 16], strides = [1, 1, 1]} : vector<4x16x16xf32> to vector<4x15x16xf32>
    %51 = vector.extract_strided_slice %46 {offsets = [0, 14, 0], sizes = [4, 1, 16], strides = [1, 1, 1]} : vector<4x16x16xf32> to vector<4x1x16xf32>
    %52 = tpu.concatenate %50, %51 in 1 : vector<4x15x16xf32>, vector<4x1x16xf32> -> vector<4x16x16xf32>
    %53 = arith.addf %46, %49 : vector<4x16x16xf32>
    %54 = arith.addf %53, %52 : vector<4x16x16xf32>
    %cst_6 = arith.constant 0.111111112 : f32
    %55 = vector.broadcast %cst_6 : f32 to vector<4x16x16xf32>
    %56 = arith.mulf %54, %55 : vector<4x16x16xf32>
    %57 = arith.mulf %19, %19 : vector<4x16x16xf32>
    %58 = arith.subf %56, %57 : vector<4x16x16xf32>
    %59 = arith.mulf %1, %1 : vector<4x16x16xf32>
    %60 = vector.extract_strided_slice %59 {offsets = [0, 0, 1], sizes = [4, 16, 1], strides = [1, 1, 1]} : vector<4x16x16xf32> to vector<4x16x1xf32>
    %61 = vector.extract_strided_slice %59 {offsets = [0, 0, 0], sizes = [4, 16, 15], strides = [1, 1, 1]} : vector<4x16x16xf32> to vector<4x16x15xf32>
    %62 = tpu.concatenate %60, %61 in 2 : vector<4x16x1xf32>, vector<4x16x15xf32> -> vector<4x16x16xf32>
    %63 = vector.extract_strided_slice %59 {offsets = [0, 0, 1], sizes = [4, 16, 15], strides = [1, 1, 1]} : vector<4x16x16xf32> to vector<4x16x15xf32>
    %64 = vector.extract_strided_slice %59 {offsets = [0, 0, 14], sizes = [4, 16, 1], strides = [1, 1, 1]} : vector<4x16x16xf32> to vector<4x16x1xf32>
    %65 = tpu.concatenate %63, %64 in 2 : vector<4x16x15xf32>, vector<4x16x1xf32> -> vector<4x16x16xf32>
    %66 = arith.addf %59, %62 : vector<4x16x16xf32>
    %67 = arith.addf %66, %65 : vector<4x16x16xf32>
    %68 = vector.extract_strided_slice %67 {offsets = [0, 1, 0], sizes = [4, 1, 16], strides = [1, 1, 1]} : vector<4x16x16xf32> to vector<4x1x16xf32>
    %69 = vector.extract_strided_slice %67 {offsets = [0, 0, 0], sizes = [4, 15, 16], strides = [1, 1, 1]} : vector<4x16x16xf32> to vector<4x15x16xf32>
    %70 = tpu.concatenate %68, %69 in 1 : vector<4x1x16xf32>, vector<4x15x16xf32> -> vector<4x16x16xf32>
    %71 = vector.extract_strided_slice %67 {offsets = [0, 1, 0], sizes = [4, 15, 16], strides = [1, 1, 1]} : vector<4x16x16xf32> to vector<4x15x16xf32>
    %72 = vector.extract_strided_slice %67 {offsets = [0, 14, 0], sizes = [4, 1, 16], strides = [1, 1, 1]} : vector<4x16x16xf32> to vector<4x1x16xf32>
    %73 = tpu.concatenate %71, %72 in 1 : vector<4x15x16xf32>, vector<4x1x16xf32> -> vector<4x16x16xf32>
    %74 = arith.addf %67, %70 : vector<4x16x16xf32>
    %75 = arith.addf %74, %73 : vector<4x16x16xf32>
    %cst_7 = arith.constant 0.111111112 : f32
    %76 = vector.broadcast %cst_7 : f32 to vector<4x16x16xf32>
    %77 = arith.mulf %75, %76 : vector<4x16x16xf32>
    %78 = arith.mulf %37, %37 : vector<4x16x16xf32>
    %79 = arith.subf %77, %78 : vector<4x16x16xf32>
    %80 = arith.mulf %0, %1 : vector<4x16x16xf32>
    %81 = vector.extract_strided_slice %80 {offsets = [0, 0, 1], sizes = [4, 16, 1], strides = [1, 1, 1]} : vector<4x16x16xf32> to vector<4x16x1xf32>
    %82 = vector.extract_strided_slice %80 {offsets = [0, 0, 0], sizes = [4, 16, 15], strides = [1, 1, 1]} : vector<4x16x16xf32> to vector<4x16x15xf32>
    %83 = tpu.concatenate %81, %82 in 2 : vector<4x16x1xf32>, vector<4x16x15xf32> -> vector<4x16x16xf32>
    %84 = vector.extract_strided_slice %80 {offsets = [0, 0, 1], sizes = [4, 16, 15], strides = [1, 1, 1]} : vector<4x16x16xf32> to vector<4x16x15xf32>
    %85 = vector.extract_strided_slice %80 {offsets = [0, 0, 14], sizes = [4, 16, 1], strides = [1, 1, 1]} : vector<4x16x16xf32> to vector<4x16x1xf32>
    %86 = tpu.concatenate %84, %85 in 2 : vector<4x16x15xf32>, vector<4x16x1xf32> -> vector<4x16x16xf32>
    %87 = arith.addf %80, %83 : vector<4x16x16xf32>
    %88 = arith.addf %87, %86 : vector<4x16x16xf32>
    %89 = vector.extract_strided_slice %88 {offsets = [0, 1, 0], sizes = [4, 1, 16], strides = [1, 1, 1]} : vector<4x16x16xf32> to vector<4x1x16xf32>
    %90 = vector.extract_strided_slice %88 {offsets = [0, 0, 0], sizes = [4, 15, 16], strides = [1, 1, 1]} : vector<4x16x16xf32> to vector<4x15x16xf32>
    %91 = tpu.concatenate %89, %90 in 1 : vector<4x1x16xf32>, vector<4x15x16xf32> -> vector<4x16x16xf32>
    %92 = vector.extract_strided_slice %88 {offsets = [0, 1, 0], sizes = [4, 15, 16], strides = [1, 1, 1]} : vector<4x16x16xf32> to vector<4x15x16xf32>
    %93 = vector.extract_strided_slice %88 {offsets = [0, 14, 0], sizes = [4, 1, 16], strides = [1, 1, 1]} : vector<4x16x16xf32> to vector<4x1x16xf32>
    %94 = tpu.concatenate %92, %93 in 1 : vector<4x15x16xf32>, vector<4x1x16xf32> -> vector<4x16x16xf32>
    %95 = arith.addf %88, %91 : vector<4x16x16xf32>
    %96 = arith.addf %95, %94 : vector<4x16x16xf32>
    %cst_8 = arith.constant 0.111111112 : f32
    %97 = vector.broadcast %cst_8 : f32 to vector<4x16x16xf32>
    %98 = arith.mulf %96, %97 : vector<4x16x16xf32>
    %99 = arith.mulf %19, %37 : vector<4x16x16xf32>
    %100 = arith.subf %98, %99 : vector<4x16x16xf32>
    %cst_9 = arith.constant 2.000000e+00 : f32
    %101 = vector.broadcast %cst_9 : f32 to vector<4x16x16xf32>
    %102 = arith.mulf %101, %19 : vector<4x16x16xf32>
    %103 = arith.mulf %102, %37 : vector<4x16x16xf32>
    %cst_10 = arith.constant 9.99999974E-5 : f32
    %104 = vector.broadcast %cst_10 : f32 to vector<4x16x16xf32>
    %105 = arith.addf %103, %104 : vector<4x16x16xf32>
    %cst_11 = arith.constant 2.000000e+00 : f32
    %106 = vector.broadcast %cst_11 : f32 to vector<4x16x16xf32>
    %107 = arith.mulf %106, %100 : vector<4x16x16xf32>
    %cst_12 = arith.constant 8.99999984E-4 : f32
    %108 = vector.broadcast %cst_12 : f32 to vector<4x16x16xf32>
    %109 = arith.addf %107, %108 : vector<4x16x16xf32>
    %110 = arith.mulf %105, %109 : vector<4x16x16xf32>
    %111 = arith.mulf %19, %19 : vector<4x16x16xf32>
    %112 = arith.mulf %37, %37 : vector<4x16x16xf32>
    %113 = arith.addf %111, %112 : vector<4x16x16xf32>
    %cst_13 = arith.constant 9.99999974E-5 : f32
    %114 = vector.broadcast %cst_13 : f32 to vector<4x16x16xf32>
    %115 = arith.addf %113, %114 : vector<4x16x16xf32>
    %116 = arith.addf %58, %79 : vector<4x16x16xf32>
    %cst_14 = arith.constant 8.99999984E-4 : f32
    %117 = vector.broadcast %cst_14 : f32 to vector<4x16x16xf32>
    %118 = arith.addf %116, %117 : vector<4x16x16xf32>
    %119 = arith.mulf %115, %118 : vector<4x16x16xf32>
    %120 = arith.divf %110, %119 : vector<4x16x16xf32>
    %cst_15 = arith.constant 1.000000e+00 : f32
    %121 = vector.broadcast %cst_15 : f32 to vector<4x16x16xf32>
    %122 = arith.subf %121, %120 : vector<4x16x16xf32>
    %cst_16 = arith.constant 5.000000e-01 : f32
    %123 = vector.broadcast %cst_16 : f32 to vector<4x16x16xf32>
    %124 = arith.mulf %122, %123 : vector<4x16x16xf32>
    %cst_17 = arith.constant 0.000000e+00 : f32
    %cst_18 = arith.constant 1.000000e+00 : f32
    %125 = vector.broadcast %cst_17 : f32 to vector<4x16x16xf32>
    %126 = arith.maximumf %125, %124 : vector<4x16x16xf32>
    %127 = vector.broadcast %cst_18 : f32 to vector<4x16x16xf32>
    %128 = arith.minimumf %127, %126 : vector<4x16x16xf32>
    %c0_19 = arith.constant 0 : index
    %c0_20 = arith.constant 0 : index
    %c0_21 = arith.constant 0 : index
    %129 = vector.load %arg3[%c0_19, %c0_20, %c0_21] : memref<4x16x16xf32, #tpu.memory_space<vmem>>, vector<4x16x16xf32>
    %130 = vector.extract_strided_slice %129 {offsets = [0, 0, 1], sizes = [4, 16, 1], strides = [1, 1, 1]} : vector<4x16x16xf32> to vector<4x16x1xf32>
    %131 = vector.extract_strided_slice %129 {offsets = [0, 0, 0], sizes = [4, 16, 15], strides = [1, 1, 1]} : vector<4x16x16xf32> to vector<4x16x15xf32>
    %132 = tpu.concatenate %130, %131 in 2 : vector<4x16x1xf32>, vector<4x16x15xf32> -> vector<4x16x16xf32>
    %133 = vector.extract_strided_slice %129 {offsets = [0, 0, 1], sizes = [4, 16, 15], strides = [1, 1, 1]} : vector<4x16x16xf32> to vector<4x16x15xf32>
    %134 = vector.extract_strided_slice %129 {offsets = [0, 0, 14], sizes = [4, 16, 1], strides = [1, 1, 1]} : vector<4x16x16xf32> to vector<4x16x1xf32>
    %135 = tpu.concatenate %133, %134 in 2 : vector<4x16x15xf32>, vector<4x16x1xf32> -> vector<4x16x16xf32>
    %136 = arith.addf %129, %132 : vector<4x16x16xf32>
    %137 = arith.addf %136, %135 : vector<4x16x16xf32>
    %138 = vector.extract_strided_slice %137 {offsets = [0, 1, 0], sizes = [4, 1, 16], strides = [1, 1, 1]} : vector<4x16x16xf32> to vector<4x1x16xf32>
    %139 = vector.extract_strided_slice %137 {offsets = [0, 0, 0], sizes = [4, 15, 16], strides = [1, 1, 1]} : vector<4x16x16xf32> to vector<4x15x16xf32>
    %140 = tpu.concatenate %138, %139 in 1 : vector<4x1x16xf32>, vector<4x15x16xf32> -> vector<4x16x16xf32>
    %141 = vector.extract_strided_slice %137 {offsets = [0, 1, 0], sizes = [4, 15, 16], strides = [1, 1, 1]} : vector<4x16x16xf32> to vector<4x15x16xf32>
    %142 = vector.extract_strided_slice %137 {offsets = [0, 14, 0], sizes = [4, 1, 16], strides = [1, 1, 1]} : vector<4x16x16xf32> to vector<4x1x16xf32>
    %143 = tpu.concatenate %141, %142 in 1 : vector<4x15x16xf32>, vector<4x1x16xf32> -> vector<4x16x16xf32>
    %144 = arith.addf %137, %140 : vector<4x16x16xf32>
    %145 = arith.addf %144, %143 : vector<4x16x16xf32>
    %cst_22 = arith.constant 0.111111112 : f32
    %146 = vector.broadcast %cst_22 : f32 to vector<4x16x16xf32>
    %147 = arith.mulf %145, %146 : vector<4x16x16xf32>
    %148 = arith.mulf %147, %128 : vector<4x16x16xf32>
    %c0_23 = arith.constant 0 : index
    %c0_24 = arith.constant 0 : index
    %c0_25 = arith.constant 0 : index
    %149 = vector.load %arg4[%c0_23, %c0_24, %c0_25] : memref<4x16x16xf32, #tpu.memory_space<vmem>>, vector<4x16x16xf32>
    tpu.vector_store %arg4[%c0_23, %c0_24, %c0_25], %148 {strides = array<i32>} : memref<4x16x16xf32, #tpu.memory_space<vmem>>, vector<4x16x16xf32>,
    return
  }
  func.func @transform_0(%arg0: i32) -> (i32, i32, i32) {
    %c0_i32 = arith.constant 0 : i32
    %c0_i32_0 = arith.constant 0 : i32
    %c0_i32_1 = arith.constant 0 : i32
    return %arg0, %c0_i32, %c0_i32_0 : i32, i32, i32
  }
  func.func @transform_1(%arg0: i32) -> (i32, i32, i32) {
    %c0_i32 = arith.constant 0 : i32
    %c0_i32_0 = arith.constant 0 : i32
    %c0_i32_1 = arith.constant 0 : i32
    return %arg0, %c0_i32, %c0_i32_0 : i32, i32, i32
  }
  func.func @transform_2(%arg0: i32) -> (i32, i32, i32) {
    %c0_i32 = arith.constant 0 : i32
    %c0_i32_0 = arith.constant 0 : i32
    %c0_i32_1 = arith.constant 0 : i32
    return %arg0, %c0_i32, %c0_i32_0 : i32, i32, i32
  }
  func.func @transform_3(%arg0: i32) -> (i32, i32, i32) {
    %c0_i32 = arith.constant 0 : i32
    %c0_i32_0 = arith.constant 0 : i32
    %c0_i32_1 = arith.constant 0 : i32
    return %arg0, %c0_i32, %c0_i32_0 : i32, i32, i32
  }
}

</mosaic_0001>

<bundles_post_ra>
// kernel: tpu_custom_call.1
= control target key start
LH: loop header
LB: loop body
LE: loop exit
PB: predicated region body
PF: predicated region fallthrough
CT: control target
= control target key end

     0   :  { %s3420_s0 = inlined_call_operand.hbm [shape: f32[8,16,16], index: 0, kind: input, shape index: {}]   ;;  %s3421_s1 = inlined_call_operand.hbm [shape: f32[8,16,16], index: 1, kind: input, shape index: {}]   ;;  %s3422_s2 = inlined_call_operand.hbm [shape: f32[8,16,16], index: 2, kind: input, shape index: {}]   ;;  %s3423_s3 = inlined_call_operand.hbm [shape: f32[8,16,16], index: 3, kind: output, shape index: {}]  }
   0x1   :  { %3445 = sst [smem:[#allocation42_spill]] %s3420_s0 }
   0x2   :  { %8 = vsyncpa [#allocation3], 0 }
   0x3   :  { %10 = vsyncpa [#allocation3 + $0x1], 0 }
   0x4   :  { %11 = vsyncpa [#allocation6], 0 }
   0x5   :  { %13 = vsyncpa [#allocation6 + $0x1], 0 }
   0x6   :  { %14 = vsyncpa [#allocation4], 0 }
   0x7   :  { %16 = vsyncpa [#allocation4 + $0x1], 0  ;;  %s2025_s12 = smov 0   ;;  %s2027_s13 = smov 0  }
   0x8   :  { %s2029_s14 = smov 0   ;;  %s2031_s15 = smov 0  }
   0x9 LB: > { %s2046_s16 = sadd.s32 4294967295, %s1993_s15   ;;  %s1713_s17 = sadd.s32 4294967294, %s1993_s15   ;;  %s1993_s15 = sphi %s2031_s15, %s3532_s15   ;;  %s1989_s14 = sphi %s2029_s14, %s3531_s14   ;;  %s1985_s13 = sphi %s2027_s13, %s3530_s13   ;;  %s1981_s12 = sphi %s2025_s12, %s3529_s12  }
   0xa   : > { %s2050_s18 = sadd.s32 1, %s1993_s15   ;;  %s29_s19 = sadd.s32 1, %s1989_s14 }
   0xb   : > { %s26_s20 = ssub.s32 %s1993_s15, %s2050_s18  ;;  %p36_p0 = scmp.ne.s32.totalorder %s1989_s14, %s1985_s13 }
   0xc   : > { %p27_p1 = scmp.eq.s32.totalorder %s26_s20, 0  ;;  %p37_p2 = scmp.eq.s32.totalorder %s1993_s15, 0 }
   0xd   : > { %p42_p3 = scmp.ne.s32.totalorder %s1985_s13, %s1981_s12  ;;  %p43_p4 = scmp.eq.s32.totalorder %s2046_s16, 0 }
   0xe   : > { %s2062_s21 = scalar_select %p27_p1, %s1989_s14, %s29_s19  }
   0xf   : > { %p38_p5 = por %p37_p2, %p36_p0  ;;  %p2064_p6 = por %p43_p4, %p42_p3 }
  0x10   : > { %p118_p7 = scmp.eq.s32.totalorder %s2046_s16, 1  ;;  %p124_p8 = scmp.eq.s32.totalorder %s1713_s17, 1 }
  0x11   : > { %s3446_s22 = scalar_select %p2064_p6, 1, 0 }
  0x12   : > { %p1769_p10 = scmp.lt.s32.totalorder %s1993_s15, 2  ;;  %p2071_p11 = por %p118_p7, %p36_p0 }
  0x13   : > { %p2075_p12 = por %p124_p8, %p42_p3  ;;  %s144_s25 = sand.u32 1, %s1989_s14  }
  0x14   : > { %s3447_s23 = scalar_select %p2071_p11, 1, 0 }
  0x15   : > { %s3448_s24 = scalar_select %p2075_p12, 1, 0 }
  0x16   : > { %s2081_s26 = sshll.u32 %s1993_s15, 10  ;;  %s2085_s27 = sshll.u32 %s144_s25, 6 }
  0x17   : > { %p2087_p13 = pnand %p1769_p10, %p38_p5  ;;  %s166_s29 = sand.u32 1, %s1993_s15  }
  0x18   : > { %s2096_s5 = scalar_lea.hbm %s3421_s1, %s2081_s26  ;;  %s170_s6 = scalar_lea.vmem [#allocation5], %s2085_s27 }
  0x19   : > { %s178_s7 = sshll.u32 %s170_s6, 4  ;;  %s2102_s8 = scalar_lea.sflag [#allocation6], %s166_s29  ;;  %s2099_s7 = int_to_ptr.vmem [resolvable:$true] %s178_s7 }
  0x1a   : > { %s1833_s9 = scalar_lea.hbm %s2096_s5, 1024  ;;  %p2108_p2 = pneg %p2087_p13 }
  0x1b   : > { %p1834_p1 = scmp.ne.s32.totalorder %s2096_s5, %s1833_s9  ;;  %s1838_s19 = scalar_lea.hbm %s3421_s1, 2048 }
  0x1c   : > { %p1839_p5 = scmp.lt.u32.totalorder %s2096_s5, %s3421_s1  ;;  %p1840_p7 = scmp.lt.u32.totalorder %s1838_s19, %s1833_s9 }
  0x1d   : > { %p1836_p3 = pnand %p2108_p2, %p1834_p1  ;;  %p1842_p10 = scmp.lt.u32.totalorder %s1833_s9, %s2096_s5 }
  0x1e   : > { %p1841_p8 = por %p1840_p7, %p1839_p5 }
  0x1f   : > { %p1837_p4 = pneg %p1836_p3 }
  0x20   : > { %p1843_p9 = por %p1842_p10, %p1841_p8 }
  0x22   : > { %p1844_p0 = pnand %p1843_p9, %p1837_p4 }
  0x24   : > { %1847 = shalt.err (!%p1844_p0)
}
  0x25   : > { %s1848_s29 = scalar_lea.vmem %s2099_s7, 1024  ;;  %s1995_s4 = smov [#allocation5]  }
  0x26   : > { %p1849_p1 = scmp.ne.s32.totalorder %s2099_s7, %s1848_s29  ;;  %s1853_s6 = sshll.u32 %s1995_s4, 4  ;;  %s1854_s6 = int_to_ptr.vmem [resolvable:$false] %s1853_s6 }
  0x27   : > { %s1855_s11 = scalar_lea.vmem %s1854_s6, 2048  ;;  %p1856_p11 = scmp.lt.s32.totalorder %s2099_s7, %s1854_s6 }
  0x28   : > { %p1851_p3 = pnand %p1849_p1, %p2108_p2  ;;  %p1857_p6 = scmp.lt.s32.totalorder %s1855_s11, %s1848_s29 }
  0x2a   : > { %p1852_p12 = pneg %p1851_p3  ;;  %p1858_p5 = por %p1857_p6, %p1856_p11 }
  0x2c   : > { %p1859_p7 = pnand %p1858_p5, %p1852_p12 }
  0x2e   : > { %1862 = shalt.err (!%p1859_p7)
}
  0x2f   : > { %s3426_s9 = smov 128   ;;  %s3428_s17 = smov 8  }
  0x30   : > { %1761 = dma.hbm_to_vmem [thread:$0]  (!%p2087_p13), %s2096_s5, 1024, %s2099_s7, %s2102_s8, %s3426_s9, %s3426_s9, %s3428_s17  }
  0x31   : > { %p208_p6 = scmp.lt.s32.totalorder %s1993_s15, 3  ;;  %s3451_s0 = sld [smem:[#allocation42_spill]] }
  0x32   : > { %p3452_p9 = scmp.ge.s32.totalorder %s1993_s15, 1  ;;  %s148_s4 = scalar_lea.vmem [#allocation2], %s2085_s27 }
  0x33   : > { %s156_s6 = sshll.u32 %s148_s4, 4  ;;  %s2153_s5 = scalar_lea.sflag [#allocation3], %s144_s25  ;;  %s2149_s6 = int_to_ptr.vmem [resolvable:$true] %s156_s6 }
  0x34   : > { %p2144_p11 = pnand %p3452_p9, %p208_p6 }
  0x36   : > { %s3453_s29 = scalar_select %p2144_p11, 1, 0 }
  0x37   : > { %s2140_s30 = scalar_lea.hbm %s3451_s0, %s2081_s26  ;;  %s1868_s20 = scalar_lea.hbm %s3451_s0, 2048 }
  0x38   : > { %s1863_s7 = scalar_lea.hbm %s2140_s30, 1024  ;;  %p1869_p8 = scmp.lt.u32.totalorder %s2140_s30, %s3451_s0 }
  0x39   : > { %p1864_p12 = scmp.ne.s32.totalorder %s2140_s30, %s1863_s7  ;;  %p1870_p10 = scmp.lt.u32.totalorder %s1868_s20, %s1863_s7 }
  0x3a   : > { %p1872_p3 = scmp.lt.u32.totalorder %s1863_s7, %s2140_s30 }
  0x3b   : > { %p1866_p0 = pnand %p1864_p12, %p2108_p2  ;;  %p1871_p1 = por %p1870_p10, %p1869_p8 }
  0x3d   : > { %p1867_p4 = pneg %p1866_p0  ;;  %p1873_p5 = por %p1872_p3, %p1871_p1 }
  0x3f   : > { %p1874_p7 = pnand %p1873_p5, %p1867_p4 }
  0x41   : > { %1877 = shalt.err (!%p1874_p7)
}
  0x42   : > { %s1878_s25 = scalar_lea.vmem %s2149_s6, 1024  ;;  %s1998_s4 = smov [#allocation2]  }
  0x43   : > { %p1879_p6 = scmp.ne.s32.totalorder %s2149_s6, %s1878_s25  ;;  %s1883_s11 = sshll.u32 %s1998_s4, 4  ;;  %s1884_s11 = int_to_ptr.vmem [resolvable:$false] %s1883_s11 }
  0x44   : > { %s1885_s9 = scalar_lea.vmem %s1884_s11, 2048  ;;  %p1886_p0 = scmp.lt.s32.totalorder %s2149_s6, %s1884_s11 }
  0x45   : > { %p1881_p9 = pnand %p1879_p6, %p2108_p2  ;;  %p1887_p11 = scmp.lt.s32.totalorder %s1885_s9, %s1878_s25 }
  0x47   : > { %p1882_p12 = pneg %p1881_p9  ;;  %p1888_p8 = por %p1887_p11, %p1886_p0 }
  0x49   : > { %p1889_p10 = pnand %p1888_p8, %p1882_p12 }
  0x4b   : > { %1892 = shalt.err (!%p1889_p10)
}
  0x4c   : > { %s3454_s17 = smov 8   ;;  %s3455_s7 = smov 128  }
  0x4d   : > { %1758 = dma.hbm_to_vmem [thread:$0]  (!%p2087_p13), %s2140_s30, 1024, %s2149_s6, %s2153_s5, %s3455_s7, %s3455_s7, %s3454_s17  }
  0x4e   : > { %s2184_s4 = scalar_lea.hbm %s3422_s2, %s2081_s26  ;;  %s192_s25 = scalar_lea.vmem [#allocation7], %s2085_s27 }
  0x4f   : > { %s200_s11 = sshll.u32 %s192_s25, 4  ;;  %s1893_s9 = scalar_lea.hbm %s2184_s4, 1024  ;;  %s2187_s11 = int_to_ptr.vmem [resolvable:$true] %s200_s11 }
  0x50   : > { %p1894_p11 = scmp.ne.s32.totalorder %s2184_s4, %s1893_s9  ;;  %s1898_s6 = scalar_lea.hbm %s3422_s2, 2048 }
  0x51   : > { %p1899_p3 = scmp.lt.u32.totalorder %s2184_s4, %s3422_s2  ;;  %p1900_p5 = scmp.lt.u32.totalorder %s1898_s6, %s1893_s9 }
  0x52   : > { %p1896_p4 = pnand %p1894_p11, %p2108_p2  ;;  %p1902_p6 = scmp.lt.u32.totalorder %s1893_s9, %s2184_s4 }
  0x53   : > { %p1901_p7 = por %p1900_p5, %p1899_p3 }
  0x54   : > { %p1897_p1 = pneg %p1896_p4 }
  0x55   : > { %p1903_p9 = por %p1902_p6, %p1901_p7 }
  0x57   : > { %p1904_p12 = pnand %p1903_p9, %p1897_p1 }
  0x59   : > { %1907 = shalt.err (!%p1904_p12)
}
  0x5a   : > { %s1908_s27 = scalar_lea.vmem %s2187_s11, 1024  ;;  %s1999_s0 = smov [#allocation7]  }
  0x5b   : > { %p1909_p0 = scmp.ne.s32.totalorder %s2187_s11, %s1908_s27  ;;  %s1913_s19 = sshll.u32 %s1999_s0, 4  ;;  %s1914_s19 = int_to_ptr.vmem [resolvable:$false] %s1913_s19 }
  0x5c   : > { %s1915_s20 = scalar_lea.vmem %s1914_s19, 2048  ;;  %p1916_p11 = scmp.lt.s32.totalorder %s2187_s11, %s1914_s19 }
  0x5d   : > { %p1911_p8 = pnand %p1909_p0, %p2108_p2  ;;  %p1917_p4 = scmp.lt.s32.totalorder %s1915_s20, %s1908_s27 }
  0x5f   : > { %p1912_p10 = pneg %p1911_p8  ;;  %p1918_p3 = por %p1917_p4, %p1916_p11 }
  0x61   : > { %p1919_p5 = pnand %p1918_p3, %p1912_p10 }
  0x63   : > { %1922 = shalt.err (!%p1919_p5)
}
  0x64   : > { %1764 = dma.hbm_to_vmem [thread:$0]  (!%p2087_p13), %s2184_s4, 1024, %s2187_s11, %s2102_s8, %s3455_s7, %s3455_s7, %s3454_s17  }
  0x65   : > { %p3456_p2 = scmp.ne.s32.totalorder %s3453_s29, 0 }
  0x67   : > { %212 = sbr.rel (%p3456_p2) target bundleno = 471 (0x1d7), region = 32 }
  0x6e   : > { %s2217_s10 = sand.u32 1, %s1985_s13   ;;  %p3457_p1 = scmp.ne.s32.totalorder %s3446_s22, 0 }
  0x6f   : > { %s2220_s25 = sshll.u32 %s2217_s10, 6  ;;  %s215_s28 = scalar_lea.sflag [#allocation3], %s2217_s10 }
  0x70   : > { %s218_s9 = scalar_lea.vmem [#allocation2], %s2220_s25 }
  0x71   : > { %1968 = dma.done.wait (%p3457_p1), %s215_s28, 1024  }
  0x72   : > { %1970 = vsyncadd (%p3457_p1), %s215_s28, 4294966272  ;;  %s223_s8 = sand.u32 1, %s2046_s16   ;;  %s2230_s17 = scalar_lea.vmem [#allocation5], %s2220_s25 }
  0x73   : > { %s224_s29 = scalar_lea.sflag [#allocation6], %s223_s8 }
  0x74   : > { %1972 = dma.done.wait (%p3457_p1), %s224_s29, 2048  }
  0x75   : > { %1974 = vsyncadd (%p3457_p1), %s224_s29, 4294965248  ;;  %v2236_v0 = vld [vmem:[%s218_s9 + $0x10] sm:$0xff]  ;;  %v2238_v1 = vld [vmem:[%s218_s9] sm:$0xff]  ;;  %s2000_s7 = smov 127   ;;  %s2001_s22 = smov 1   ;;  %vm345_vm0 = vcmask 7168  }
  0x76   : > { %301 = vrot.lane.b32.xlu1 %v2236_v0, %s2000_s7  ;;  %297 = vrot.lane.b32.xlu0 %v2238_v1, %s2000_s7  ;;  %v2244_v2 = vld [vmem:[%s218_s9 + $0x18] sm:$0xff]  ;;  %v2246_v3 = vld [vmem:[%s218_s9 + $0x8] sm:$0xff]  ;;  %v2346_v17 = vmul.f32 %v2238_v1, %v2238_v1  ;;  %v2358_v19 = vmul.f32 %v2236_v0, %v2236_v0  ;;  %vm354_vm1 = vcmask 121856   ;;  %vm420_vm2 = vcmask 1046528   ;;  %s2596_s4 = scalar_lea.vmem [#allocation7], %s2220_s25  ;;  %s3327_s11 = scalar_lea.vmem [#allocation8], %s2220_s25 }
  0x77   : > { %v2252_v4 = vld [vmem:[%s218_s9 + $0x28] sm:$0xff]  ;;  %v2254_v5 = vld [vmem:[%s218_s9 + $0x20] sm:$0xff]  ;;  %v2260_v6 = vld [vmem:[%s218_s9 + $0x38] sm:$0xff]  ;;  %v2342_v16 = vmul.f32 %v2246_v3, %v2246_v3  ;;  %v2354_v18 = vmul.f32 %v2244_v2, %v2244_v2  ;;  %vm395_vm3 = vcmask 1040384   ;;  %vm1573_vm4 = vcmask 130048   ;;  %s1746_s30 = sshll.u32 %s2046_s16, 10 }
  0x78   : > { %v2262_v7 = vld [vmem:[%s218_s9 + $0x30] sm:$0xff]  ;;  %v2285_v8 = vld [vmem:[%s2230_s17 + $0x8] sm:$0xff]  ;;  %v2288_v9 = vld [vmem:[%s2230_s17] sm:$0xff]  ;;  %v2366_v20 = vmul.f32 %v2252_v4, %v2252_v4  ;;  %v2370_v21 = vmul.f32 %v2254_v5, %v2254_v5  ;;  %v2378_v22 = vmul.f32 %v2260_v6, %v2260_v6  ;;  %s1597_s6 = sshll.u32 %s3327_s11, 4  ;;  %s3370_s27 = scalar_lea.hbm %s3423_s3, %s1746_s30  ;;  %s3372_s6 = int_to_ptr.vmem [resolvable:$true] %s1597_s6 }
  0x79   : > { %v2295_v10 = vld [vmem:[%s2230_s17 + $0x18] sm:$0xff]  ;;  %v2298_v11 = vld [vmem:[%s2230_s17 + $0x10] sm:$0xff]  ;;  %v2305_v12 = vld [vmem:[%s2230_s17 + $0x28] sm:$0xff]  ;;  %v2382_v23 = vmul.f32 %v2262_v7, %v2262_v7  ;;  %v2406_v24 = vmul.f32 %v2285_v8, %v2285_v8  ;;  %v2410_v25 = vmul.f32 %v2288_v9, %v2288_v9  ;;  %v2470_v38 = vmul.f32 %v2285_v8, %v2246_v3  ;;  %s1583_s16 = scalar_lea.sflag [#allocation4], %s2217_s10  ;;  %s1923_s0 = scalar_lea.vmem %s3372_s6, 1024 }
  0x7a   : > { %303 = vrot.lane.b32.xlu1 %v2244_v2, %s2000_s7  ;;  %299 = vrot.lane.b32.xlu0 %v2246_v3, %s2000_s7  ;;  %v2308_v13 = vld [vmem:[%s2230_s17 + $0x20] sm:$0xff]  ;;  %v2315_v14 = vld [vmem:[%s2230_s17 + $0x38] sm:$0xff]  ;;  %v2418_v26 = vmul.f32 %v2295_v10, %v2295_v10  ;;  %v2422_v27 = vmul.f32 %v2298_v11, %v2298_v11  ;;  %v2430_v28 = vmul.f32 %v2305_v12, %v2305_v12  ;;  %p1924_p13 = scmp.ne.s32.totalorder %s3372_s6, %s1923_s0  ;;  %p3526_p7 = scmp.ne.s32.totalorder %s3447_s23, 0 }
  0x7b   : > { %v2318_v15 = vld [vmem:[%s2230_s17 + $0x30] sm:$0xff]  ;;  %3458 = vst [vmem:[#allocation12_spill] sm:$0xff] %v2410_v25  ;;  %v2434_v29 = vmul.f32 %v2308_v13, %v2308_v13  ;;  %v2442_v30 = vmul.f32 %v2315_v14, %v2315_v14  ;;  %3465 = vst [vmem:[#allocation19_spill] sm:$0xff] %v2470_v38  ;;  %v2474_v39 = vmul.f32 %v2288_v9, %v2238_v1  ;;  %s2002_s19 = smov [#allocation8]  }
  0x7c   : > { %3459 = vst [vmem:[#allocation13_spill] sm:$0xff] %v2418_v26  ;;  %3460 = vst [vmem:[#allocation14_spill] sm:$0xff] %v2422_v27  ;;  %v2446_v31 = vmul.f32 %v2318_v15, %v2318_v15  ;;  %v2486_v42 = vmul.f32 %v2295_v10, %v2244_v2  ;;  %v2490_v43 = vmul.f32 %v2298_v11, %v2236_v0  ;;  %p1925_p6 = pnand %p1924_p13, %p3526_p7  ;;  %s1927_s20 = sshll.u32 %s2002_s19, 4  ;;  %s1928_s20 = int_to_ptr.vmem [resolvable:$false] %s1927_s20 }
  0x7d   : > { %3461 = vst [vmem:[#allocation15_spill] sm:$0xff] %v2430_v28  ;;  %3462 = vst [vmem:[#allocation16_spill] sm:$0xff] %v2434_v29  ;;  %v2494_v46 = vmul.f32 %v2305_v12, %v2252_v4  ;;  %v2508_v53 = vmul.f32 %v2308_v13, %v2254_v5  ;;  %v2512_v58 = vmul.f32 %v2315_v14, %v2260_v6  ;;  %s1929_s25 = scalar_lea.vmem %s1928_s20, 2048  ;;  %p1930_p12 = scmp.lt.s32.totalorder %s3372_s6, %s1928_s20 }
  0x7e   : > { %307 = vrot.lane.b32.xlu1 %v2252_v4, %s2000_s7  ;;  %305 = vrot.lane.b32.xlu0 %v2254_v5, %s2000_s7  ;;  %3463 = vst [vmem:[#allocation17_spill] sm:$0xff] %v2442_v30  ;;  %3464 = vst [vmem:[#allocation18_spill] sm:$0xff] %v2446_v31  ;;  %p1926_p9 = pneg %p1925_p6  ;;  %p1931_p0 = scmp.lt.s32.totalorder %s1929_s25, %s1923_s0 }
  0x7f   : > { %3466 = vst [vmem:[#allocation20_spill] sm:$0xff] %v2474_v39  ;;  %3467 = vst [vmem:[#allocation21_spill] sm:$0xff] %v2486_v42 }
  0x80   : > { %3468 = vst [vmem:[#allocation22_spill] sm:$0xff] %v2490_v43  ;;  %3469 = vst [vmem:[#allocation23_spill] sm:$0xff] %v2494_v46  ;;  %p1932_p8 = por %p1931_p0, %p1930_p12 }
  0x81   : > { %3470 = vst [vmem:[#allocation24_spill] sm:$0xff] %v2508_v53  ;;  %3471 = vst [vmem:[#allocation25_spill] sm:$0xff] %v2512_v58 }
  0x82   : > { %311 = vrot.lane.b32.xlu1 %v2260_v6, %s2000_s7  ;;  %309 = vrot.lane.b32.xlu0 %v2262_v7, %s2000_s7  ;;  %p1933_p10 = pnand %p1932_p8, %p1926_p9 }
  0x86   : > { %323 = vrot.lane.b32.xlu1 %v2246_v3, %s2001_s22  ;;  %321 = vrot.lane.b32.xlu0 %v2238_v1, %s2001_s22 }
  0x8a   : > { %327 = vrot.lane.b32.xlu1 %v2244_v2, %s2001_s22  ;;  %325 = vrot.lane.b32.xlu0 %v2236_v0, %s2001_s22 }
  0x8e   : > { %331 = vrot.lane.b32.xlu1 %v2252_v4, %s2001_s22  ;;  %329 = vrot.lane.b32.xlu0 %v2254_v5, %s2001_s22 }
  0x92   : > { %335 = vrot.lane.b32.xlu1 %v2260_v6, %s2001_s22  ;;  %333 = vrot.lane.b32.xlu0 %v2262_v7, %s2001_s22 }
  0x96   : > { %479 = vrot.lane.b32.xlu1 %v2285_v8, %s2000_s7  ;;  %477 = vrot.lane.b32.xlu0 %v2288_v9, %s2000_s7 }
  0x9a   : > { %483 = vrot.lane.b32.xlu1 %v2295_v10, %s2000_s7  ;;  %481 = vrot.lane.b32.xlu0 %v2298_v11, %s2000_s7 }
  0x9e   : > { %487 = vrot.lane.b32.xlu1 %v2305_v12, %s2000_s7  ;;  %485 = vrot.lane.b32.xlu0 %v2308_v13, %s2000_s7 }
  0xa2   : > { %491 = vrot.lane.b32.xlu1 %v2315_v14, %s2000_s7  ;;  %489 = vrot.lane.b32.xlu0 %v2318_v15, %s2000_s7 }
  0xa6   : > { %503 = vrot.lane.b32.xlu1 %v2285_v8, %s2001_s22  ;;  %501 = vrot.lane.b32.xlu0 %v2288_v9, %s2001_s22 }
  0xaa   : > { %507 = vrot.lane.b32.xlu1 %v2295_v10, %s2001_s22  ;;  %505 = vrot.lane.b32.xlu0 %v2298_v11, %s2001_s22 }
  0xae   : > { %511 = vrot.lane.b32.xlu1 %v2305_v12, %s2001_s22  ;;  %509 = vrot.lane.b32.xlu0 %v2308_v13, %s2001_s22 }
  0xb2   : > { %515 = vrot.lane.b32.xlu1 %v2315_v14, %s2001_s22  ;;  %513 = vrot.lane.b32.xlu0 %v2318_v15, %s2001_s22 }
  0xb6   : > { %663 = vrot.lane.b32.xlu1 %v2342_v16, %s2000_s7  ;;  %661 = vrot.lane.b32.xlu0 %v2346_v17, %s2000_s7 }
  0xba   : > { %667 = vrot.lane.b32.xlu1 %v2354_v18, %s2000_s7  ;;  %665 = vrot.lane.b32.xlu0 %v2358_v19, %s2000_s7 }
  0xbe   : > { %671 = vrot.lane.b32.xlu1 %v2366_v20, %s2000_s7  ;;  %669 = vrot.lane.b32.xlu0 %v2370_v21, %s2000_s7 }
  0xc2   : > { %675 = vrot.lane.b32.xlu1 %v2378_v22, %s2000_s7  ;;  %673 = vrot.lane.b32.xlu0 %v2382_v23, %s2000_s7 }
  0xc6   : > { %687 = vrot.lane.b32.xlu1 %v2342_v16, %s2001_s22  ;;  %685 = vrot.lane.b32.xlu0 %v2346_v17, %s2001_s22 }
  0xca   : > { %691 = vrot.lane.b32.xlu1 %v2354_v18, %s2001_s22  ;;  %689 = vrot.lane.b32.xlu0 %v2358_v19, %s2001_s22 }
  0xce   : > { %695 = vrot.lane.b32.xlu1 %v2366_v20, %s2001_s22  ;;  %693 = vrot.lane.b32.xlu0 %v2370_v21, %s2001_s22 }
  0xd2   : > { %699 = vrot.lane.b32.xlu1 %v2378_v22, %s2001_s22  ;;  %697 = vrot.lane.b32.xlu0 %v2382_v23, %s2001_s22 }
  0xd6   : > { %863 = vrot.lane.b32.xlu1 %v2406_v24, %s2000_s7  ;;  %861 = vrot.lane.b32.xlu0 %v2410_v25, %s2000_s7 }
  0xda   : > { %867 = vrot.lane.b32.xlu1 %v2418_v26, %s2000_s7  ;;  %865 = vrot.lane.b32.xlu0 %v2422_v27, %s2000_s7 }
  0xde   : > { %871 = vrot.lane.b32.xlu1 %v2430_v28, %s2000_s7  ;;  %869 = vrot.lane.b32.xlu0 %v2434_v29, %s2000_s7 }
  0xe2   : > { %875 = vrot.lane.b32.xlu1 %v2442_v30, %s2000_s7  ;;  %873 = vrot.lane.b32.xlu0 %v2446_v31, %s2000_s7 }
  0xe6   : > { %887 = vrot.lane.b32.xlu1 %v2406_v24, %s2001_s22  ;;  %885 = vrot.lane.b32.xlu0 %v2410_v25, %s2001_s22 }
  0xe8   : > { %v302_v32 = vpop.permute.xlu1 %301  ;;  %v298_v33 = vpop.permute.xlu0 %297 }
  0xea   : > { %891 = vrot.lane.b32.xlu1 %v2418_v26, %s2001_s22  ;;  %889 = vrot.lane.b32.xlu0 %v2422_v27, %s2001_s22 }
  0xec   : > { %v304_v34 = vpop.permute.xlu1 %303  ;;  %v300_v35 = vpop.permute.xlu0 %299 }
  0xee   : > { %895 = vrot.lane.b32.xlu1 %v2430_v28, %s2001_s22  ;;  %893 = vrot.lane.b32.xlu0 %v2434_v29, %s2001_s22 }
  0xf0   : > { %v308_v36 = vpop.permute.xlu1 %307  ;;  %v306_v37 = vpop.permute.xlu0 %305 }
  0xf2   : > { %899 = vrot.lane.b32.xlu1 %v2442_v30, %s2001_s22  ;;  %897 = vrot.lane.b32.xlu0 %v2446_v31, %s2001_s22 }
  0xf4   : > { %v2476_v40 = vpop.permute.xlu1 %311  ;;  %v2478_v41 = vpop.permute.xlu0 %309 }
  0xf6   : > { %1063 = vrot.lane.b32.xlu1 %v2470_v38, %s2000_s7  ;;  %1061 = vrot.lane.b32.xlu0 %v2474_v39, %s2000_s7 }
  0xf8   : > { %v324_v44 = vpop.permute.xlu1 %323  ;;  %v322_v45 = vpop.permute.xlu0 %321 }
  0xf9   : > { %v347_v47 = vsel %vm345_vm0, %v300_v35, %v324_v44  ;;  %v356_v48 = vsel %vm354_vm1, %v300_v35, %v324_v44  ;;  %v346_v49 = vsel %vm345_vm0, %v298_v33, %v322_v45  ;;  %v355_v50 = vsel %vm354_vm1, %v298_v33, %v322_v45 }
  0xfa   : > { %v364_v51 = vadd.f32 %v347_v47, %v2246_v3  ;;  %v363_v52 = vadd.f32 %v346_v49, %v2238_v1  ;;  %1067 = vrot.lane.b32.xlu1 %v2486_v42, %s2000_s7  ;;  %1065 = vrot.lane.b32.xlu0 %v2490_v43, %s2000_s7 }
  0xfc   : > { %v372_v54 = vadd.f32 %v364_v51, %v356_v48  ;;  %v371_v55 = vadd.f32 %v363_v52, %v355_v50  ;;  %v328_v56 = vpop.permute.xlu1 %327  ;;  %v326_v57 = vpop.permute.xlu0 %325 }
  0xfd   : > { %v349_v59 = vsel %vm345_vm0, %v304_v34, %v328_v56  ;;  %v358_v60 = vsel %vm354_vm1, %v304_v34, %v328_v56  ;;  %v348_v61 = vsel %vm345_vm0, %v302_v32, %v326_v57  ;;  %v357_v62 = vsel %vm354_vm1, %v302_v32, %v326_v57 }
  0xfe   : > { %v397_v63 = vrot.slane %v372_v54, 7  ;;  %v421_v1 = vrot.slane %v372_v54, 1  ;;  %v383_v3 = vrot.slane %v371_v55, 1  ;;  %v396_v33 = vrot.slane %v371_v55, 7  ;;  %1071 = vrot.lane.b32.xlu1 %v2494_v46, %s2000_s7  ;;  %1069 = vrot.lane.b32.xlu0 %v2508_v53, %s2000_s7 }
  0xff   : > { %v366_v35 = vadd.f32 %v349_v59, %v2244_v2  ;;  %v365_v44 = vadd.f32 %v348_v61, %v2236_v0  ;;  %v2526_v34 = vmul.f32 %v2318_v15, %v2262_v7 }
 0x100   : > { %v441_v32 = vsel %vm420_vm2, %v421_v1, %v397_v63  ;;  %v398_v45 = vsel %vm395_vm3, %v396_v33, %v397_v63  ;;  %v416_v47 = vsel %vm395_vm3, %v383_v3, %v396_v33  ;;  %v422_v48 = vsel %vm420_vm2, %v383_v3, %v421_v1  ;;  %v332_v49 = vpop.permute.xlu1 %331  ;;  %v330_v50 = vpop.permute.xlu0 %329 }
 0x101   : > { %3472 = vst [vmem:[#allocation26_spill] sm:$0xff] %v2526_v34  ;;  %v445_v51 = vadd.f32 %v416_v47, %v371_v55  ;;  %v446_v52 = vadd.f32 %v398_v45, %v372_v54  ;;  %v374_v56 = vadd.f32 %v366_v35, %v358_v60  ;;  %v373_v2 = vadd.f32 %v365_v44, %v357_v62 }
 0x102   : > { %v351_v0 = vsel %vm345_vm0, %v308_v36, %v332_v49  ;;  %v360_v57 = vsel %vm354_vm1, %v308_v36, %v332_v49  ;;  %v350_v59 = vsel %vm345_vm0, %v306_v37, %v330_v50  ;;  %v359_v61 = vsel %vm354_vm1, %v306_v37, %v330_v50  ;;  %1075 = vrot.lane.b32.xlu1 %v2512_v58, %s2000_s7 }
 0x103   : > { %v2538_v63 = vadd.f32 %v445_v51, %v422_v48  ;;  %v2540_v1 = vadd.f32 %v446_v52, %v441_v32  ;;  %v400_v3 = vrot.slane %v374_v56, 7  ;;  %v423_v55 = vrot.slane %v374_v56, 1  ;;  %1073 = vrot.lane.b32.xlu0 %v2526_v34, %s2000_s7 }
 0x104   : > { %v384_v54 = vrot.slane %v373_v2, 1  ;;  %v399_v60 = vrot.slane %v373_v2, 7  ;;  %v368_v36 = vadd.f32 %v351_v0, %v2252_v4  ;;  %v367_v62 = vadd.f32 %v350_v59, %v2254_v5  ;;  %v336_v33 = vpop.permute.xlu1 %335  ;;  %v334_v37 = vpop.permute.xlu0 %333 }
 0x105   : > { %v353_v35 = vsel %vm345_vm0, %v2476_v40, %v336_v33  ;;  %v442_v48 = vsel %vm420_vm2, %v423_v55, %v400_v3  ;;  %v362_v52 = vsel %vm354_vm1, %v2476_v40, %v336_v33 }
 0x106   : > { %v401_v44 = vsel %vm395_vm3, %v399_v60, %v400_v3  ;;  %v417_v32 = vsel %vm395_vm3, %v384_v54, %v399_v60  ;;  %v424_v45 = vsel %vm420_vm2, %v384_v54, %v423_v55  ;;  %v376_v47 = vadd.f32 %v368_v36, %v360_v57  ;;  %1087 = vrot.lane.b32.xlu1 %v2470_v38, %s2001_s22 }
 0x107   : > { %v447_v4 = vadd.f32 %v417_v32, %v373_v2  ;;  %v448_v49 = vadd.f32 %v401_v44, %v374_v56  ;;  %1085 = vrot.lane.b32.xlu0 %v2474_v39, %s2001_s22  ;;  %v375_v51 = vadd.f32 %v367_v62, %v359_v61  ;;  %v370_v60 = vadd.f32 %v353_v35, %v2260_v6 }
 0x108   : > { %v403_v5 = vrot.slane %v376_v47, 7  ;;  %v425_v50 = vrot.slane %v376_v47, 1  ;;  %v480_v0 = vpop.permute.xlu1 %479  ;;  %v478_v59 = vpop.permute.xlu0 %477  ;;  %v352_v3 = vsel %vm345_vm0, %v2478_v41, %v334_v37  ;;  %v361_v55 = vsel %vm354_vm1, %v2478_v41, %v334_v37 }
 0x109   : > { %v455_v54 = vadd.f32 %v447_v4, %v424_v45  ;;  %v456_v57 = vadd.f32 %v448_v49, %v442_v48  ;;  %v385_v2 = vrot.slane %v375_v51, 1  ;;  %v402_v56 = vrot.slane %v375_v51, 7 }
 0x10a   : > { %1091 = vrot.lane.b32.xlu1 %v2486_v42, %s2001_s22  ;;  %v378_v61 = vadd.f32 %v370_v60, %v362_v52  ;;  %v369_v40 = vadd.f32 %v352_v3, %v2262_v7  ;;  %v443_v44 = vsel %vm420_vm2, %v425_v50, %v403_v5 }
 0x10b   : > { %1089 = vrot.lane.b32.xlu0 %v2490_v43, %s2001_s22  ;;  %v404_v36 = vsel %vm395_vm3, %v402_v56, %v403_v5  ;;  %v418_v6 = vsel %vm395_vm3, %v385_v2, %v402_v56  ;;  %v426_v62 = vsel %vm420_vm2, %v385_v2, %v425_v50  ;;  %v2599_v56 = vld [vmem:[%s2596_s4 + $0x8] sm:$0xff] }
 0x10c   : > { %v2571_v33 = vpop.permute.xlu1 %483  ;;  %v2573_v35 = vpop.permute.xlu0 %481  ;;  %v449_v41 = vadd.f32 %v418_v6, %v375_v51  ;;  %v450_v37 = vadd.f32 %v404_v36, %v376_v47  ;;  %v406_v32 = vrot.slane %v378_v61, 7  ;;  %v427_v45 = vrot.slane %v378_v61, 1  ;;  %v2607_v6 = vld [vmem:[%s2596_s4] sm:$0xff] }
 0x10d   : > { %v377_v7 = vadd.f32 %v369_v40, %v361_v55 }
 0x10e   : > { %1095 = vrot.lane.b32.xlu1 %v2494_v46, %s2001_s22  ;;  %v2578_v48 = vadd.f32 %v449_v41, %v426_v62  ;;  %v2580_v4 = vadd.f32 %v450_v37, %v443_v44  ;;  %v444_v55 = vsel %vm420_vm2, %v427_v45, %v406_v32  ;;  %v2616_v41 = vmul.f32 0.11111111, %v2538_v63  ;;  %v2624_v44 = vld [vmem:[%s2596_s4 + $0x18] sm:$0xff] }
 0x10f   : > { %1093 = vrot.lane.b32.xlu0 %v2508_v53, %s2001_s22  ;;  %v386_v49 = vrot.slane %v377_v7, 1  ;;  %v405_v52 = vrot.slane %v377_v7, 7  ;;  %v2619_v37 = vmul.f32 0.11111111, %v2540_v1 }
 0x110   : > { %v2584_v51 = vpop.permute.xlu1 %487  ;;  %v2586_v47 = vpop.permute.xlu0 %485 }
 0x111   : > { %v407_v5 = vsel %vm395_vm3, %v405_v52, %v406_v32  ;;  %v419_v50 = vsel %vm395_vm3, %v386_v49, %v405_v52  ;;  %v428_v60 = vsel %vm420_vm2, %v386_v49, %v427_v45  ;;  %v2626_v32 = vmul.f32 0.11111111, %v455_v54  ;;  %v2631_v52 = vld [vmem:[%s2596_s4 + $0x10] sm:$0xff] }
 0x112   : > { %1099 = vrot.lane.b32.xlu1 %v2512_v58, %s2001_s22  ;;  %v451_v3 = vadd.f32 %v419_v50, %v377_v7  ;;  %v452_v2 = vadd.f32 %v407_v5, %v378_v61  ;;  %v2628_v45 = vmul.f32 0.11111111, %v456_v57  ;;  %v2641_v54 = vmul.f32 2.0, %v2616_v41 }
 0x113   : > { %1097 = vrot.lane.b32.xlu0 %v2526_v34, %s2001_s22  ;;  %v2644_v57 = vmul.f32 2.0, %v2619_v37 }
 0x114   : > { %v2602_v40 = vpop.permute.xlu1 %491  ;;  %v2604_v36 = vpop.permute.xlu0 %489  ;;  %v2609_v61 = vadd.f32 %v451_v3, %v428_v60  ;;  %v2611_v62 = vadd.f32 %v452_v2, %v444_v55  ;;  %v2660_v2 = vmul.f32 2.0, %v2628_v45 }
 0x116   : > { %1399 = vrot.lane.b32.xlu1 %v2599_v56, %s2000_s7 }
 0x117   : > { %1397 = vrot.lane.b32.xlu0 %v2607_v6, %s2000_s7 }
 0x118   : > { %v504_v7 = vpop.permute.xlu1 %503  ;;  %v502_v49 = vpop.permute.xlu0 %501 }
 0x119   : > { %v526_v63 = vsel %vm345_vm0, %v480_v0, %v504_v7  ;;  %v534_v5 = vsel %vm354_vm1, %v480_v0, %v504_v7  ;;  %v525_v50 = vsel %vm345_vm0, %v478_v59, %v502_v49  ;;  %v533_v60 = vsel %vm354_vm1, %v478_v59, %v502_v49  ;;  %v2650_v0 = vld [vmem:[%s2596_s4 + $0x28] sm:$0xff] }
 0x11a   : > { %v542_v1 = vadd.f32 %v526_v63, %v2285_v8  ;;  %1403 = vrot.lane.b32.xlu1 %v2624_v44, %s2000_s7  ;;  %v541_v3 = vadd.f32 %v525_v50, %v2288_v9  ;;  %v2654_v8 = vmul.f32 %v2616_v41, %v2616_v41  ;;  %v2657_v59 = vmul.f32 2.0, %v2626_v32  ;;  %v2663_v9 = vld [vmem:[%s2596_s4 + $0x20] sm:$0xff] }
 0x11b   : > { %1401 = vrot.lane.b32.xlu0 %v2631_v52, %s2000_s7  ;;  %v2667_v63 = vmul.f32 %v2619_v37, %v2619_v37 }
 0x11c   : > { %v550_v55 = vadd.f32 %v542_v1, %v534_v5  ;;  %v508_v7 = vpop.permute.xlu1 %507  ;;  %v506_v49 = vpop.permute.xlu0 %505  ;;  %v549_v50 = vadd.f32 %v541_v3, %v533_v60 }
 0x11d   : > { %v528_v34 = vsel %vm345_vm0, %v2571_v33, %v508_v7  ;;  %v536_v58 = vsel %vm354_vm1, %v2571_v33, %v508_v7  ;;  %v527_v53 = vsel %vm345_vm0, %v2573_v35, %v506_v49  ;;  %v535_v43 = vsel %vm354_vm1, %v2573_v35, %v506_v49  ;;  %v2684_v33 = vld [vmem:[%s2596_s4 + $0x38] sm:$0xff] }
 0x11e   : > { %v574_v5 = vrot.slane %v550_v55, 7  ;;  %v597_v1 = vrot.slane %v550_v55, 1  ;;  %v544_v46 = vadd.f32 %v528_v34, %v2295_v10  ;;  %1407 = vrot.lane.b32.xlu1 %v2650_v0, %s2000_s7  ;;  %v561_v60 = vrot.slane %v549_v50, 1 }
 0x11f   : > { %v573_v3 = vrot.slane %v549_v50, 7  ;;  %v543_v42 = vadd.f32 %v527_v53, %v2298_v11  ;;  %1405 = vrot.lane.b32.xlu0 %v2663_v9, %s2000_s7  ;;  %v2688_v7 = vmul.f32 %v2626_v32, %v2626_v32  ;;  %v2691_v10 = vmul.f32 0.11111111, %v2578_v48  ;;  %v2698_v53 = vld [vmem:[%s2596_s4 + $0x30] sm:$0xff] }
 0x120   : > { %v2694_v34 = vmul.f32 0.11111111, %v2580_v4  ;;  %v617_v35 = vsel %vm420_vm2, %v597_v1, %v574_v5  ;;  %v552_v49 = vadd.f32 %v544_v46, %v536_v58  ;;  %v512_v39 = vpop.permute.xlu1 %511  ;;  %v510_v11 = vpop.permute.xlu0 %509  ;;  %v598_v30 = vsel %vm420_vm2, %v561_v60, %v597_v1 }
 0x121   : > { %v575_v38 = vsel %vm395_vm3, %v573_v3, %v574_v5  ;;  %v593_v31 = vsel %vm395_vm3, %v561_v60, %v573_v3  ;;  %v551_v29 = vadd.f32 %v543_v42, %v535_v43  ;;  %v530_v58 = vsel %vm345_vm0, %v2584_v51, %v512_v39 }
 0x122   : > { %v621_v28 = vadd.f32 %v593_v31, %v549_v50  ;;  %v622_v48 = vadd.f32 %v575_v38, %v550_v55  ;;  %v577_v27 = vrot.slane %v552_v49, 7  ;;  %v599_v26 = vrot.slane %v552_v49, 1  ;;  %1411 = vrot.lane.b32.xlu1 %v2684_v33, %s2000_s7 }
 0x123   : > { %v562_v4 = vrot.slane %v551_v29, 1  ;;  %v576_v46 = vrot.slane %v551_v29, 7  ;;  %v538_v5 = vsel %vm354_vm1, %v2584_v51, %v512_v39  ;;  %1409 = vrot.lane.b32.xlu0 %v2698_v53, %s2000_s7  ;;  %v546_v38 = vadd.f32 %v530_v58, %v2305_v12 }
 0x124   : > { %v629_v1 = vadd.f32 %v621_v28, %v598_v30  ;;  %v630_v42 = vadd.f32 %v622_v48, %v617_v35  ;;  %v618_v31 = vsel %vm420_vm2, %v599_v26, %v577_v27  ;;  %v516_v43 = vpop.permute.xlu1 %515  ;;  %v514_v55 = vpop.permute.xlu0 %513  ;;  %v529_v39 = vsel %vm345_vm0, %v2586_v47, %v510_v11 }
 0x125   : > { %v578_v50 = vsel %vm395_vm3, %v576_v46, %v577_v27  ;;  %v594_v60 = vsel %vm395_vm3, %v562_v4, %v576_v46  ;;  %v600_v3 = vsel %vm420_vm2, %v562_v4, %v599_v26  ;;  %v554_v12 = vadd.f32 %v546_v38, %v538_v5 }
 0x126   : > { %v2718_v51 = vmul.f32 0.11111111, %v629_v1  ;;  %v2720_v25 = vmul.f32 0.11111111, %v630_v42  ;;  %v623_v28 = vadd.f32 %v594_v60, %v551_v29  ;;  %v624_v30 = vadd.f32 %v578_v50, %v552_v49  ;;  %1423 = vrot.lane.b32.xlu1 %v2599_v56, %s2001_s22 }
 0x127   : > { %v537_v27 = vsel %vm354_vm1, %v2586_v47, %v510_v11  ;;  %v545_v35 = vadd.f32 %v529_v39, %v2308_v13  ;;  %v532_v26 = vsel %vm345_vm0, %v2602_v40, %v516_v43  ;;  %1421 = vrot.lane.b32.xlu0 %v2607_v6, %s2001_s22  ;;  %v580_v13 = vrot.slane %v554_v12, 7 }
 0x128   : > { %v2733_v48 = vmul.f32 %v2641_v54, %v2718_v51  ;;  %v2737_v29 = vmul.f32 %v2644_v57, %v2720_v25  ;;  %v631_v56 = vadd.f32 %v623_v28, %v600_v3  ;;  %v632_v49 = vadd.f32 %v624_v30, %v618_v31  ;;  %v2739_v4 = vpop.permute.xlu1 %663  ;;  %v2741_v47 = vpop.permute.xlu0 %661 }
 0x129   : > { %v601_v11 = vrot.slane %v554_v12, 1  ;;  %v553_v46 = vadd.f32 %v545_v35, %v537_v27  ;;  %v540_v6 = vsel %vm354_vm1, %v2602_v40, %v516_v43  ;;  %v1249_v58 = vmul.f32 2.0, %v2691_v10 }
 0x12a   : > { %3473 = vst [vmem:[#allocation27_spill] sm:$0xff] %v2733_v48  ;;  %3474 = vst [vmem:[#allocation28_spill] sm:$0xff] %v2737_v29  ;;  %v2746_v54 = vmul.f32 0.11111111, %v631_v56  ;;  %v548_v5 = vadd.f32 %v532_v26, %v2315_v14  ;;  %1427 = vrot.lane.b32.xlu1 %v2624_v44, %s2001_s22  ;;  %v2753_v57 = vmul.f32 %v2628_v45, %v2628_v45  ;;  %v1250_v1 = vmul.f32 2.0, %v2694_v34 }
 0x12b   : > { %v2756_v42 = vmul.f32 0.11111111, %v632_v49  ;;  %v563_v31 = vrot.slane %v553_v46, 1  ;;  %v579_v38 = vrot.slane %v553_v46, 7  ;;  %1425 = vrot.lane.b32.xlu0 %v2631_v52, %s2001_s22  ;;  %v531_v44 = vsel %vm345_vm0, %v2604_v36, %v514_v55 }
 0x12c   : > { %v2762_v40 = vmul.f32 %v2657_v59, %v2746_v54  ;;  %v556_v14 = vadd.f32 %v548_v5, %v540_v6  ;;  %v539_v43 = vsel %vm354_vm1, %v2604_v36, %v514_v55  ;;  %v2768_v50 = vpop.permute.xlu1 %667  ;;  %v2770_v60 = vpop.permute.xlu0 %665  ;;  %v2780_v28 = vmul.f32 0.11111111, %v2609_v61 }
 0x12d   : > { %v2774_v3 = vmul.f32 %v2660_v2, %v2756_v42  ;;  %v581_v52 = vsel %vm395_vm3, %v579_v38, %v580_v13  ;;  %v595_v59 = vsel %vm395_vm3, %v563_v31, %v579_v38  ;;  %v602_v39 = vsel %vm420_vm2, %v563_v31, %v601_v11 }
 0x12e   : > { %3475 = vst [vmem:[#allocation29_spill] sm:$0xff] %v2762_v40  ;;  %v2783_v30 = vmul.f32 0.11111111, %v2611_v62  ;;  %v625_v36 = vadd.f32 %v595_v59, %v553_v46  ;;  %v626_v55 = vadd.f32 %v581_v52, %v554_v12  ;;  %1431 = vrot.lane.b32.xlu1 %v2650_v0, %s2001_s22  ;;  %v619_v2 = vsel %vm420_vm2, %v601_v11, %v580_v13 }
 0x12f   : > { %3476 = vst [vmem:[#allocation30_spill] sm:$0xff] %v2774_v3  ;;  %v583_v27 = vrot.slane %v556_v14, 7  ;;  %v547_v35 = vadd.f32 %v531_v44, %v2318_v15  ;;  %1429 = vrot.lane.b32.xlu0 %v2663_v9, %s2001_s22  ;;  %v2793_v61 = vmul.f32 %v2718_v51, %v2718_v51  ;;  %v2801_v0 = vmul.f32 %v2720_v25, %v2720_v25 }
 0x130   : > { %v633_v26 = vadd.f32 %v625_v36, %v602_v39  ;;  %v634_v62 = vadd.f32 %v626_v55, %v619_v2  ;;  %v2795_v56 = vpop.permute.xlu1 %671  ;;  %v2797_v12 = vpop.permute.xlu0 %669  ;;  %v2805_v15 = vmul.f32 %v2746_v54, %v2746_v54  ;;  %v603_v49 = vrot.slane %v556_v14, 1 }
 0x131   : > { %v555_v9 = vadd.f32 %v547_v35, %v539_v43  ;;  %v2809_v13 = vadd.f32 %v2793_v61, %v2654_v8  ;;  %v2813_v11 = vmul.f32 %v2756_v42, %v2756_v42  ;;  %v2819_v5 = vadd.f32 %v2801_v0, %v2667_v63 }
 0x132   : > { %v641_v46 = vmul.f32 0.11111111, %v633_v26  ;;  %v642_v6 = vmul.f32 0.11111111, %v634_v62  ;;  %1435 = vrot.lane.b32.xlu1 %v2684_v33, %s2001_s22  ;;  %v2823_v31 = vadd.f32 %v2805_v15, %v2688_v7  ;;  %v2841_v36 = vmul.f32 %v2691_v10, %v2691_v10 }
 0x133   : > { %v564_v38 = vrot.slane %v555_v9, 1  ;;  %v582_v44 = vrot.slane %v555_v9, 7  ;;  %1433 = vrot.lane.b32.xlu0 %v2698_v53, %s2001_s22  ;;  %v2829_v43 = vadd.f32 %v2813_v11, %v2753_v57  ;;  %v2845_v55 = vmul.f32 %v2694_v34, %v2694_v34 }
 0x134   : > { %v2831_v52 = vmul.f32 %v1249_v58, %v641_v46  ;;  %v2833_v33 = vmul.f32 %v1250_v1, %v642_v6  ;;  %v2835_v59 = vpop.permute.xlu1 %675  ;;  %v2837_v39 = vpop.permute.xlu0 %673  ;;  %v1251_v53 = vmul.f32 2.0, %v2780_v28  ;;  %v1252_v35 = vmul.f32 2.0, %v2783_v30 }
 0x135   : > { %3477 = vst [vmem:[#allocation31_spill] sm:$0xff] %v2829_v43  ;;  %v584_v2 = vsel %vm395_vm3, %v582_v44, %v583_v27  ;;  %v596_v58 = vsel %vm395_vm3, %v564_v38, %v582_v44  ;;  %v604_v1 = vsel %vm420_vm2, %v564_v38, %v603_v49  ;;  %v620_v26 = vsel %vm420_vm2, %v603_v49, %v583_v27 }
 0x136   : > { %3478 = vst [vmem:[#allocation32_spill] sm:$0xff] %v2831_v52  ;;  %3479 = vst [vmem:[#allocation33_spill] sm:$0xff] %v2833_v33  ;;  %v627_v62 = vadd.f32 %v596_v58, %v555_v9  ;;  %v628_v33 = vadd.f32 %v584_v2, %v556_v14  ;;  %v2853_v52 = vmul.f32 %v641_v46, %v641_v46 }
 0x137   : > { %v2855_v3 = vmul.f32 %v642_v6, %v642_v6  ;;  %v2859_v40 = vmul.f32 %v2718_v51, %v2616_v41  ;;  %v2863_v29 = vmul.f32 %v2720_v25, %v2619_v37  ;;  %v2867_v27 = vmul.f32 %v2746_v54, %v2626_v32 }
 0x138   : > { %v635_v44 = vadd.f32 %v627_v62, %v604_v1  ;;  %v636_v38 = vadd.f32 %v628_v33, %v620_v26  ;;  %v688_v48 = vpop.permute.xlu1 %687  ;;  %v686_v43 = vpop.permute.xlu0 %685  ;;  %v2871_v14 = vmul.f32 %v2756_v42, %v2628_v45  ;;  %v2889_v42 = vadd.f32 %v2853_v52, %v2841_v36 }
 0x139   : > { %3480 = vst [vmem:[#allocation34_spill] sm:$0xff] %v2867_v27  ;;  %v710_v41 = vsel %vm345_vm0, %v2739_v4, %v688_v48  ;;  %v718_v51 = vsel %vm354_vm1, %v2739_v4, %v688_v48  ;;  %v709_v25 = vsel %vm345_vm0, %v2741_v47, %v686_v43  ;;  %v717_v37 = vsel %vm354_vm1, %v2741_v47, %v686_v43 }
 0x13a   : > { %3481 = vst [vmem:[#allocation35_spill] sm:$0xff] %v2871_v14  ;;  %v2881_v49 = vmul.f32 0.11111111, %v635_v44  ;;  %v2883_v32 = vmul.f32 0.11111111, %v636_v38  ;;  %v726_v54 = vadd.f32 %v710_v41, %v2342_v16  ;;  %v725_v45 = vadd.f32 %v709_v25, %v2346_v17 }
 0x13b   : > { %v2893_v48 = vadd.f32 %v2855_v3, %v2845_v55  ;;  %v2896_v4 = vmul.f32 %v641_v46, %v2691_v10  ;;  %v2899_v47 = vmul.f32 %v642_v6, %v2694_v34 }
 0x13c   : > { %v2902_v9 = vmul.f32 %v1251_v53, %v2881_v49  ;;  %v2905_v16 = vmul.f32 %v1252_v35, %v2883_v32  ;;  %v734_v17 = vadd.f32 %v726_v54, %v718_v51  ;;  %v733_v43 = vadd.f32 %v725_v45, %v717_v37  ;;  %v692_v33 = vpop.permute.xlu1 %691  ;;  %v690_v2 = vpop.permute.xlu0 %689 }
 0x13d   : > { %3482 = vst [vmem:[#allocation36_spill] sm:$0xff] %v2896_v4  ;;  %3483 = vst [vmem:[#allocation37_spill] sm:$0xff] %v2899_v47  ;;  %v712_v58 = vsel %vm345_vm0, %v2768_v50, %v692_v33  ;;  %v720_v10 = vsel %vm354_vm1, %v2768_v50, %v692_v33  ;;  %v711_v34 = vsel %vm345_vm0, %v2770_v60, %v690_v2 }
 0x13e   : > { %3484 = vst [vmem:[#allocation38_spill] sm:$0xff] %v2902_v9  ;;  %3485 = vst [vmem:[#allocation39_spill] sm:$0xff] %v2905_v16  ;;  %v719_v46 = vsel %vm354_vm1, %v2770_v60, %v690_v2  ;;  %v758_v6 = vrot.slane %v734_v17, 7  ;;  %v781_v53 = vrot.slane %v734_v17, 1  ;;  %v745_v1 = vrot.slane %v733_v43, 1 }
 0x13f   : > { %v757_v35 = vrot.slane %v733_v43, 7  ;;  %v728_v26 = vadd.f32 %v712_v58, %v2354_v18  ;;  %v727_v62 = vadd.f32 %v711_v34, %v2358_v19  ;;  %v2920_v50 = vmul.f32 %v2780_v28, %v2780_v28 }
 0x140   : > { %v801_v44 = vsel %vm420_vm2, %v781_v53, %v758_v6  ;;  %v696_v38 = vpop.permute.xlu1 %695  ;;  %v694_v41 = vpop.permute.xlu0 %693  ;;  %v2924_v51 = vmul.f32 %v2783_v30, %v2783_v30  ;;  %v782_v18 = vsel %vm420_vm2, %v745_v1, %v781_v53 }
 0x141   : > { %v759_v60 = vsel %vm395_vm3, %v757_v35, %v758_v6  ;;  %v777_v25 = vsel %vm395_vm3, %v745_v1, %v757_v35  ;;  %v736_v37 = vadd.f32 %v728_v26, %v720_v10  ;;  %v735_v45 = vadd.f32 %v727_v62, %v719_v46 }
 0x142   : > { %v805_v19 = vadd.f32 %v777_v25, %v733_v43  ;;  %v806_v54 = vadd.f32 %v759_v60, %v734_v17  ;;  %v714_v33 = vsel %vm345_vm0, %v2795_v56, %v696_v38  ;;  %v722_v34 = vsel %vm354_vm1, %v2795_v56, %v696_v38 }
 0x143   : > { %v761_v2 = vrot.slane %v736_v37, 7  ;;  %v783_v58 = vrot.slane %v736_v37, 1  ;;  %v730_v16 = vadd.f32 %v714_v33, %v2366_v20  ;;  %v746_v47 = vrot.slane %v735_v45, 1 }
 0x144   : > { %v813_v9 = vadd.f32 %v805_v19, %v782_v18  ;;  %v814_v6 = vadd.f32 %v806_v54, %v801_v44  ;;  %v760_v35 = vrot.slane %v735_v45, 7  ;;  %v700_v4 = vpop.permute.xlu1 %699  ;;  %v698_v53 = vpop.permute.xlu0 %697  ;;  %v713_v17 = vsel %vm345_vm0, %v2797_v12, %v694_v41 }
 0x145   : > { %v738_v10 = vadd.f32 %v730_v16, %v722_v34  ;;  %v721_v43 = vsel %vm354_vm1, %v2797_v12, %v694_v41  ;;  %v2940_v46 = vmul.f32 %v2881_v49, %v2881_v49  ;;  %v802_v16 = vsel %vm420_vm2, %v783_v58, %v761_v2 }
 0x146   : > { %v2942_v56 = vmul.f32 0.11111111, %v813_v9  ;;  %v2944_v20 = vmul.f32 0.11111111, %v814_v6  ;;  %v762_v1 = vsel %vm395_vm3, %v760_v35, %v761_v2  ;;  %v778_v26 = vsel %vm395_vm3, %v746_v47, %v760_v35 }
 0x147   : > { %v784_v62 = vsel %vm420_vm2, %v746_v47, %v783_v58  ;;  %v807_v44 = vadd.f32 %v778_v26, %v735_v45  ;;  %v808_v38 = vadd.f32 %v762_v1, %v736_v37  ;;  %v764_v9 = vrot.slane %v738_v10, 7 }
 0x148   : > { %v729_v60 = vadd.f32 %v713_v17, %v2370_v21  ;;  %v2955_v25 = vpop.permute.xlu1 %863  ;;  %v2957_v18 = vpop.permute.xlu0 %861  ;;  %v716_v47 = vsel %vm345_vm0, %v2835_v59, %v700_v4  ;;  %v724_v37 = vsel %vm354_vm1, %v2835_v59, %v700_v4  ;;  %v785_v45 = vrot.slane %v738_v10, 1 }
 0x149   : > { %v815_v19 = vadd.f32 %v807_v44, %v784_v62  ;;  %v816_v54 = vadd.f32 %v808_v38, %v802_v16  ;;  %v732_v2 = vadd.f32 %v716_v47, %v2378_v22  ;;  %v715_v58 = vsel %vm345_vm0, %v2837_v39, %v698_v53 }
 0x14a   : > { %v737_v33 = vadd.f32 %v729_v60, %v721_v43  ;;  %v723_v6 = vsel %vm354_vm1, %v2837_v39, %v698_v53  ;;  %v731_v35 = vadd.f32 %v715_v58, %v2382_v23  ;;  %v2977_v22 = vmul.f32 %v2883_v32, %v2883_v32 }
 0x14b   : > { %v2966_v21 = vmul.f32 0.11111111, %v815_v19  ;;  %v2968_v34 = vmul.f32 0.11111111, %v816_v54  ;;  %v740_v26 = vadd.f32 %v732_v2, %v724_v37  ;;  %v2985_v23 = vadd.f32 %v2940_v46, %v2920_v50 }
 0x14c   : > { %v747_v17 = vrot.slane %v737_v33, 1  ;;  %v763_v1 = vrot.slane %v737_v33, 7  ;;  %v868_v59 = vpop.permute.xlu1 %867  ;;  %v2973_v4 = vpop.permute.xlu0 %865  ;;  %v739_v62 = vadd.f32 %v731_v35, %v723_v6  ;;  %v803_v37 = vsel %vm420_vm2, %v785_v45, %v764_v9 }
 0x14d   : > { %v767_v38 = vrot.slane %v740_v26, 7  ;;  %v787_v54 = vrot.slane %v740_v26, 1  ;;  %v2997_v35 = vadd.f32 %v2977_v22, %v2924_v51 }
 0x14e   : > { %v765_v39 = vsel %vm395_vm3, %v763_v1, %v764_v9  ;;  %v779_v53 = vsel %vm395_vm3, %v747_v17, %v763_v1  ;;  %v786_v44 = vsel %vm420_vm2, %v747_v17, %v785_v45  ;;  %v748_v47 = vrot.slane %v739_v62, 1 }
 0x14f   : > { %v809_v60 = vadd.f32 %v779_v53, %v737_v33  ;;  %v810_v19 = vadd.f32 %v765_v39, %v738_v10  ;;  %v766_v2 = vrot.slane %v739_v62, 7  ;;  %v3001_v1 = vmul.f32 %v2881_v49, %v2780_v28 }
 0x150   : > { %v2991_v58 = vpop.permute.xlu1 %871  ;;  %v2993_v6 = vpop.permute.xlu0 %869  ;;  %v788_v10 = vsel %vm420_vm2, %v748_v47, %v787_v54  ;;  %v3008_v45 = vmul.f32 %v2883_v32, %v2783_v30  ;;  %v804_v28 = vsel %vm420_vm2, %v787_v54, %v767_v38 }
 0x151   : > { %3486 = vst [vmem:[#allocation40_spill] sm:$0xff] %v3001_v1  ;;  %v817_v17 = vadd.f32 %v809_v60, %v786_v44  ;;  %v818_v33 = vadd.f32 %v810_v19, %v803_v37  ;;  %v768_v39 = vsel %vm395_vm3, %v766_v2, %v767_v38  ;;  %v780_v9 = vsel %vm395_vm3, %v748_v47, %v766_v2  ;;  %v3489_v19 = vld [vmem:[#allocation13_spill] sm:$0xff] }
 0x152   : > { %3487 = vst [vmem:[#allocation41_spill] sm:$0xff] %v3008_v45  ;;  %v811_v43 = vadd.f32 %v780_v9, %v739_v62  ;;  %v812_v41 = vadd.f32 %v768_v39, %v740_v26 }
 0x153   : > { %v3010_v53 = vmul.f32 0.11111111, %v817_v17  ;;  %v3012_v16 = vmul.f32 0.11111111, %v818_v33  ;;  %v3488_v33 = vld [vmem:[#allocation12_spill] sm:$0xff] }
 0x154   : > { %v3015_v49 = vpop.permute.xlu1 %875  ;;  %v3017_v44 = vpop.permute.xlu0 %873  ;;  %v819_v30 = vadd.f32 %v811_v43, %v788_v10  ;;  %v820_v32 = vadd.f32 %v812_v41, %v804_v28 }
 0x156   : > { %v3023_v47 = vmul.f32 0.11111111, %v819_v30  ;;  %v3025_v37 = vmul.f32 0.11111111, %v820_v32 }
 0x158   : > { %v888_v62 = vpop.permute.xlu1 %887  ;;  %v886_v26 = vpop.permute.xlu0 %885 }
 0x159   : > { %v910_v2 = vsel %vm345_vm0, %v2955_v25, %v888_v62  ;;  %v909_v41 = vsel %vm345_vm0, %v2957_v18, %v886_v26  ;;  %v918_v43 = vsel %vm354_vm1, %v2955_v25, %v888_v62  ;;  %v917_v9 = vsel %vm354_vm1, %v2957_v18, %v886_v26 }
 0x15a   : > { %v926_v17 = vadd.f32 %v910_v2, %v2406_v24  ;;  %v925_v10 = vadd.f32 %v909_v41, %v3488_v33  ;;  %v3049_v26 = vadd.f32 0.0001, %v2809_v13 }
 0x15c   : > { %v934_v39 = vadd.f32 %v926_v17, %v918_v43  ;;  %v892_v28 = vpop.permute.xlu1 %891  ;;  %v890_v30 = vpop.permute.xlu0 %889  ;;  %v933_v32 = vadd.f32 %v925_v10, %v917_v9  ;;  %v3490_v17 = vld [vmem:[#allocation14_spill] sm:$0xff] }
 0x15d   : > { %v912_v54 = vsel %vm345_vm0, %v868_v59, %v892_v28  ;;  %v911_v24 = vsel %vm345_vm0, %v2973_v4, %v890_v30  ;;  %v920_v62 = vsel %vm354_vm1, %v868_v59, %v892_v28  ;;  %v919_v33 = vsel %vm354_vm1, %v2973_v4, %v890_v30 }
 0x15e   : > { %v958_v2 = vrot.slane %v934_v39, 7  ;;  %v981_v38 = vrot.slane %v934_v39, 1  ;;  %v928_v60 = vadd.f32 %v912_v54, %v3489_v19  ;;  %v945_v12 = vrot.slane %v933_v32, 1 }
 0x15f   : > { %v957_v25 = vrot.slane %v933_v32, 7  ;;  %v927_v41 = vadd.f32 %v911_v24, %v3490_v17 }
 0x160   : > { %v1001_v18 = vsel %vm420_vm2, %v981_v38, %v958_v2  ;;  %v936_v43 = vadd.f32 %v928_v60, %v920_v62  ;;  %v896_v10 = vpop.permute.xlu1 %895  ;;  %v894_v9 = vpop.permute.xlu0 %893  ;;  %v982_v54 = vsel %vm420_vm2, %v945_v12, %v981_v38 }
 0x161   : > { %v959_v45 = vsel %vm395_vm3, %v957_v25, %v958_v2  ;;  %v977_v19 = vsel %vm395_vm3, %v945_v12, %v957_v25  ;;  %v935_v59 = vadd.f32 %v927_v41, %v919_v33  ;;  %v914_v60 = vsel %vm345_vm0, %v2991_v58, %v896_v10  ;;  %v3491_v25 = vld [vmem:[#allocation15_spill] sm:$0xff] }
 0x162   : > { %v1005_v28 = vadd.f32 %v977_v19, %v933_v32  ;;  %v1006_v24 = vadd.f32 %v959_v45, %v934_v39  ;;  %v961_v17 = vrot.slane %v936_v43, 7  ;;  %v983_v1 = vrot.slane %v936_v43, 1 }
 0x163   : > { %v946_v14 = vrot.slane %v935_v59, 1  ;;  %v960_v13 = vrot.slane %v935_v59, 7  ;;  %v922_v4 = vsel %vm354_vm1, %v2991_v58, %v896_v10  ;;  %v930_v27 = vadd.f32 %v914_v60, %v3491_v25 }
 0x164   : > { %v1013_v30 = vadd.f32 %v1005_v28, %v982_v54  ;;  %v1014_v62 = vadd.f32 %v1006_v24, %v1001_v18  ;;  %v1002_v2 = vsel %vm420_vm2, %v983_v1, %v961_v17  ;;  %v900_v12 = vpop.permute.xlu1 %899  ;;  %v3062_v38 = vpop.permute.xlu0 %897  ;;  %v913_v41 = vsel %vm345_vm0, %v2993_v6, %v894_v9  ;;  %v3492_v28 = vld [vmem:[#allocation16_spill] sm:$0xff] }
 0x165   : > { %v962_v45 = vsel %vm395_vm3, %v960_v13, %v961_v17  ;;  %v978_v39 = vsel %vm395_vm3, %v946_v14, %v960_v13  ;;  %v984_v32 = vsel %vm420_vm2, %v946_v14, %v983_v1  ;;  %v938_v19 = vadd.f32 %v930_v27, %v922_v4 }
 0x166   : > { %v1021_v33 = vmul.f32 0.11111111, %v1013_v30  ;;  %v1022_v58 = vmul.f32 0.11111111, %v1014_v62  ;;  %v1007_v10 = vadd.f32 %v978_v39, %v935_v59  ;;  %v1008_v18 = vadd.f32 %v962_v45, %v936_v43 }
 0x167   : > { %v921_v54 = vsel %vm354_vm1, %v2993_v6, %v894_v9  ;;  %v929_v24 = vadd.f32 %v913_v41, %v3492_v28  ;;  %v916_v17 = vsel %vm345_vm0, %v3015_v49, %v900_v12  ;;  %v1302_v27 = vadd.f32 0.0001, %v2819_v5  ;;  %v3495_v41 = vld [vmem:[#allocation17_spill] sm:$0xff] }
 0x168   : > { %v1037_v13 = vsub.f32 %v1021_v33, %v2793_v61  ;;  %v1038_v14 = vsub.f32 %v1022_v58, %v2801_v0  ;;  %v1015_v1 = vadd.f32 %v1007_v10, %v984_v32  ;;  %v1016_v60 = vadd.f32 %v1008_v18, %v1002_v2  ;;  %v3076_v25 = vpop.permute.xlu1 %1063  ;;  %v3078_v30 = vpop.permute.xlu0 %1061 }
 0x169   : > { %v1303_v43 = vadd.f32 0.0001, %v2823_v31  ;;  %v964_v6 = vrot.slane %v938_v19, 7  ;;  %v937_v9 = vadd.f32 %v929_v24, %v921_v54  ;;  %v3493_v59 = vsub.f32 %v2942_v56, %v2654_v8  ;;  %v3496_v56 = vld [vmem:[#allocation31_spill] sm:$0xff] }
 0x16a   : > { %v3494_v61 = vsub.f32 %v2944_v20, %v2667_v63  ;;  %v1023_v62 = vmul.f32 0.11111111, %v1015_v1  ;;  %v1024_v2 = vmul.f32 0.11111111, %v1016_v60  ;;  %v985_v45 = vrot.slane %v938_v19, 1 }
 0x16b   : > { %v1309_v4 = vadd.f32 %v1037_v13, %v3493_v59  ;;  %v947_v39 = vrot.slane %v937_v9, 1  ;;  %v963_v32 = vrot.slane %v937_v9, 7  ;;  %v932_v33 = vadd.f32 %v916_v17, %v3495_v41 }
 0x16c   : > { %v1310_v0 = vadd.f32 %v1038_v14, %v3494_v61  ;;  %v1039_v31 = vsub.f32 %v1023_v62, %v2805_v15  ;;  %v1040_v10 = vsub.f32 %v1024_v2, %v2813_v11  ;;  %v3091_v18 = vpop.permute.xlu1 %1067  ;;  %v3093_v8 = vpop.permute.xlu0 %1065  ;;  %v1304_v63 = vadd.f32 0.0001, %v3496_v56 }
 0x16d   : > { %v1317_v5 = vadd.f32 0.0009, %v1309_v4  ;;  %v965_v20 = vsel %vm395_vm3, %v963_v32, %v964_v6  ;;  %v979_v54 = vsel %vm395_vm3, %v947_v39, %v963_v32  ;;  %v924_v28 = vsel %vm354_vm1, %v3015_v49, %v900_v12 }
 0x16e   : > { %v1318_v58 = vadd.f32 0.0009, %v1310_v0  ;;  %v3497_v15 = vsub.f32 %v2966_v21, %v2688_v7  ;;  %v3498_v13 = vsub.f32 %v2968_v34, %v2753_v57  ;;  %v1003_v1 = vsel %vm420_vm2, %v985_v45, %v964_v6  ;;  %v3499_v0 = vld [vmem:[#allocation18_spill] sm:$0xff] }
 0x16f   : > { %v3101_v24 = vmul.f32 %v1317_v5, %v3049_v26  ;;  %v986_v60 = vsel %vm420_vm2, %v947_v39, %v985_v45  ;;  %v1009_v59 = vadd.f32 %v979_v54, %v937_v9  ;;  %v1010_v4 = vadd.f32 %v965_v20, %v938_v19 }
 0x170   : > { %v3103_v17 = vmul.f32 %v1318_v58, %v1302_v27  ;;  %v1311_v11 = vadd.f32 %v1039_v31, %v3497_v15  ;;  %v1312_v14 = vadd.f32 %v1040_v10, %v3498_v13  ;;  %v940_v26 = vadd.f32 %v932_v33, %v924_v28  ;;  %v3116_v61 = vpop.permute.xlu1 %1071  ;;  %v3118_v7 = vpop.permute.xlu0 %1069  ;;  %v3500_v33 = vld [vmem:[#allocation27_spill] sm:$0xff]  ;;  %v3504_v15 = vld [vmem:[#allocation32_spill] sm:$0xff] }
 0x171   : > { %v915_v27 = vsel %vm345_vm0, %v3017_v44, %v3062_v38  ;;  %v1017_v21 = vadd.f32 %v1009_v59, %v986_v60  ;;  %v1018_v57 = vadd.f32 %v1010_v4, %v1003_v1  ;;  %v923_v2 = vsel %vm354_vm1, %v3017_v44, %v3062_v38  ;;  %v3503_v44 = vld [vmem:[#allocation30_spill] sm:$0xff] }
 0x172   : > { %v1319_v49 = vadd.f32 0.0009, %v1311_v11  ;;  %v1320_v12 = vadd.f32 0.0009, %v1312_v14  ;;  %v931_v9 = vadd.f32 %v915_v27, %v3499_v0  ;;  %v967_v45 = vrot.slane %v940_v26, 7 }
 0x173   : > { %v1025_v19 = vmul.f32 0.11111111, %v1017_v21  ;;  %v1026_v62 = vmul.f32 0.11111111, %v1018_v57  ;;  %v987_v39 = vrot.slane %v940_v26, 1  ;;  %1809 = vrcp.f32 %v3101_v24 }
 0x174   : > { %v3120_v34 = vmul.f32 %v1319_v49, %v1303_v43  ;;  %v3122_v6 = vmul.f32 %v1320_v12, %v1304_v63  ;;  %v939_v32 = vadd.f32 %v931_v9, %v923_v2  ;;  %v3128_v41 = vpop.permute.xlu1 %1075  ;;  %v3131_v5 = vadd.f32 0.0001, %v3500_v33  ;;  %v3501_v43 = vld [vmem:[#allocation28_spill] sm:$0xff]  ;;  %v3502_v63 = vld [vmem:[#allocation29_spill] sm:$0xff] }
 0x175   : > { %v3134_v58 = vadd.f32 0.0001, %v3501_v43  ;;  %v1041_v31 = vsub.f32 %v1025_v19, %v2853_v52  ;;  %v1042_v10 = vsub.f32 %v1026_v62, %v2855_v3  ;;  %v3138_v56 = vpop.permute.xlu0 %1073  ;;  %v3141_v20 = vadd.f32 0.0001, %v3502_v63 }
 0x176   : > { %v3144_v38 = vadd.f32 0.0001, %v3503_v44  ;;  %v948_v54 = vrot.slane %v939_v32, 1  ;;  %v966_v28 = vrot.slane %v939_v32, 7  ;;  %v3147_v11 = vadd.f32 0.0001, %v3504_v15 }
 0x177   : > { %v1305_v13 = vadd.f32 0.0001, %v2889_v42  ;;  %v3505_v52 = vsub.f32 %v3010_v53, %v2841_v36  ;;  %v3506_v3 = vsub.f32 %v3012_v16, %v2845_v55  ;;  %v1306_v60 = vadd.f32 0.0001, %v2893_v48 }
 0x178   : > { %v968_v59 = vsel %vm395_vm3, %v966_v28, %v967_v45  ;;  %v980_v4 = vsel %vm395_vm3, %v948_v54, %v966_v28  ;;  %v988_v49 = vsel %vm420_vm2, %v948_v54, %v987_v39  ;;  %v1088_v12 = vpop.permute.xlu1 %1087  ;;  %v1004_v36 = vsel %vm420_vm2, %v987_v39, %v967_v45  ;;  %v3507_v45 = vld [vmem:[#allocation19_spill] sm:$0xff] }
 0x179   : > { %v1313_v14 = vadd.f32 %v1041_v31, %v3505_v52  ;;  %v1314_v1 = vadd.f32 %v1042_v10, %v3506_v3  ;;  %v1011_v42 = vadd.f32 %v980_v4, %v939_v32  ;;  %v1012_v57 = vadd.f32 %v968_v59, %v940_v26  ;;  %v1086_v0 = vpop.permute.xlu0 %1085 }
 0x17a   : > { %v1307_v53 = vadd.f32 0.0001, %v2985_v23  ;;  %v1110_v55 = vsel %vm345_vm0, %v3076_v25, %v1088_v12  ;;  %v1109_v48 = vsel %vm345_vm0, %v3078_v30, %v1086_v0  ;;  %v1308_v2 = vadd.f32 0.0001, %v2997_v35  ;;  %v3508_v23 = vld [vmem:[#allocation20_spill] sm:$0xff] }
 0x17b   : > { %v1321_v27 = vadd.f32 0.0009, %v1313_v14  ;;  %v1322_v21 = vadd.f32 0.0009, %v1314_v1  ;;  %v1019_v19 = vadd.f32 %v1011_v42, %v988_v49  ;;  %v1020_v62 = vadd.f32 %v1012_v57, %v1004_v36 }
 0x17c   : > { %v1118_v26 = vsel %vm354_vm1, %v3076_v25, %v1088_v12  ;;  %v1126_v39 = vadd.f32 %v1110_v55, %v3507_v45  ;;  %v1125_v32 = vadd.f32 %v1109_v48, %v3508_v23  ;;  %v1092_v33 = vpop.permute.xlu1 %1091  ;;  %v1117_v10 = vsel %vm354_vm1, %v3078_v30, %v1086_v0 }
 0x17d   : > { %v3166_v16 = vmul.f32 %v1321_v27, %v1305_v13  ;;  %v3168_v9 = vmul.f32 %v1322_v21, %v1306_v60  ;;  %v1027_v43 = vmul.f32 0.11111111, %v1019_v19  ;;  %v1028_v31 = vmul.f32 0.11111111, %v1020_v62  ;;  %v1090_v44 = vpop.permute.xlu0 %1089  ;;  %v3509_v13 = vld [vmem:[#allocation21_spill] sm:$0xff] }
 0x17e   : > { %v1112_v63 = vsel %vm345_vm0, %v3091_v18, %v1092_v33  ;;  %v1134_v35 = vadd.f32 %v1126_v39, %v1118_v26  ;;  %v1133_v54 = vadd.f32 %v1125_v32, %v1117_v10  ;;  %v1120_v25 = vsel %vm354_vm1, %v3091_v18, %v1092_v33  ;;  %v3513_v32 = vld [vmem:[#allocation33_spill] sm:$0xff] }
 0x17f   : > { %v1043_v28 = vsub.f32 %v1027_v43, %v2940_v46  ;;  %v1044_v15 = vsub.f32 %v1028_v31, %v2977_v22  ;;  %v1128_v52 = vadd.f32 %v1112_v63, %v3509_v13  ;;  %v1111_v30 = vsel %vm345_vm0, %v3093_v8, %v1090_v44  ;;  %v3514_v31 = vld [vmem:[#allocation23_spill] sm:$0xff] }
 0x180   : > { %v1158_v14 = vrot.slane %v1134_v35, 7  ;;  %v1181_v3 = vrot.slane %v1134_v35, 1  ;;  %v1145_v1 = vrot.slane %v1133_v54, 1  ;;  %v1157_v60 = vrot.slane %v1133_v54, 7  ;;  %v1096_v59 = vpop.permute.xlu1 %1095 }
 0x181   : > { %v3510_v24 = vsub.f32 %v3023_v47, %v2920_v50  ;;  %v3511_v18 = vsub.f32 %v3025_v37, %v2924_v51  ;;  %v1136_v49 = vadd.f32 %v1128_v52, %v1120_v25  ;;  %v1119_v22 = vsel %vm354_vm1, %v3093_v8, %v1090_v44  ;;  %v1094_v12 = vpop.permute.xlu0 %1093  ;;  %v3512_v37 = vld [vmem:[#allocation22_spill] sm:$0xff] }
 0x182   : > { %v1201_v27 = vsel %vm420_vm2, %v1181_v3, %v1158_v14  ;;  %v1159_v21 = vsel %vm395_vm3, %v1157_v60, %v1158_v14  ;;  %v1177_v42 = vsel %vm395_vm3, %v1145_v1, %v1157_v60  ;;  %v1182_v57 = vsel %vm420_vm2, %v1145_v1, %v1181_v3 }
 0x183   : > { %v1315_v4 = vadd.f32 %v1043_v28, %v3510_v24  ;;  %v1316_v46 = vadd.f32 %v1044_v15, %v3511_v18  ;;  %v1205_v47 = vadd.f32 %v1177_v42, %v1133_v54  ;;  %v1206_v36 = vadd.f32 %v1159_v21, %v1134_v35  ;;  %v1810_v35 = vpop.eup %1809 }
 0x184   : > { %v1161_v55 = vrot.slane %v1136_v49, 7  ;;  %v1183_v51 = vrot.slane %v1136_v49, 1  ;;  %v1127_v48 = vadd.f32 %v1111_v30, %v3512_v37  ;;  %v1114_v8 = vsel %vm345_vm0, %v3116_v61, %v1096_v59  ;;  %v1100_v19 = vpop.permute.xlu1 %1099  ;;  %v3515_v30 = vld [vmem:[#allocation24_spill] sm:$0xff] }
 0x185   : > { %v1323_v0 = vadd.f32 0.0009, %v1315_v4  ;;  %v1324_v50 = vadd.f32 0.0009, %v1316_v46  ;;  %v1213_v45 = vadd.f32 %v1205_v47, %v1182_v57  ;;  %v1214_v39 = vadd.f32 %v1206_v36, %v1201_v27  ;;  %v3206_v23 = vpop.permute.xlu0 %1097 }
 0x186   : > { %v3209_v33 = vadd.f32 0.0001, %v3513_v32  ;;  %1811 = vrcp.f32 %v3103_v17  ;;  %v1135_v43 = vadd.f32 %v1127_v48, %v1119_v22  ;;  %v1130_v10 = vadd.f32 %v1114_v8, %v3514_v31  ;;  %v3517_v31 = vld [vmem:[#allocation34_spill] sm:$0xff] }
 0x187   : > { %v3202_v62 = vmul.f32 %v1323_v0, %v1307_v53  ;;  %v3204_v26 = vmul.f32 %v1324_v50, %v1308_v2  ;;  %v1221_v63 = vmul.f32 0.11111111, %v1213_v45  ;;  %v1222_v44 = vmul.f32 0.11111111, %v1214_v39 }
 0x188   : > { %v1122_v53 = vsel %vm354_vm1, %v3116_v61, %v1096_v59  ;;  %v1113_v2 = vsel %vm345_vm0, %v3118_v7, %v1094_v12  ;;  %1813 = vrcp.f32 %v3120_v34  ;;  %v1146_v54 = vrot.slane %v1135_v43, 1  ;;  %v3218_v15 = vpop.permute.xlu1 %1399 }
 0x189   : > { %v1160_v25 = vrot.slane %v1135_v43, 7  ;;  %v1138_v28 = vadd.f32 %v1130_v10, %v1122_v53  ;;  %v1237_v17 = vsub.f32 %v1221_v63, %v2859_v40  ;;  %v1238_v13 = vsub.f32 %v1222_v44, %v2863_v29  ;;  %v3224_v61 = vpop.permute.xlu0 %1397 }
 0x18a   : > { %v1202_v52 = vsel %vm420_vm2, %v1183_v51, %v1161_v55  ;;  %v1129_v14 = vadd.f32 %v1113_v2, %v3515_v30  ;;  %v1184_v34 = vsel %vm420_vm2, %v1146_v54, %v1183_v51  ;;  %v1121_v60 = vsel %vm354_vm1, %v3118_v7, %v1094_v12 }
 0x18b   : > { %v1162_v3 = vsel %vm395_vm3, %v1160_v25, %v1161_v55  ;;  %v1178_v1 = vsel %vm395_vm3, %v1146_v54, %v1160_v25  ;;  %v1269_v59 = vmul.f32 2.0, %v1237_v17  ;;  %v1270_v24 = vmul.f32 2.0, %v1238_v13 }
 0x18c   : > { %v1207_v40 = vadd.f32 %v1178_v1, %v1135_v43  ;;  %v1208_v4 = vadd.f32 %v1162_v3, %v1136_v49  ;;  %v1164_v29 = vrot.slane %v1138_v28, 7  ;;  %v1185_v18 = vrot.slane %v1138_v28, 1  ;;  %v3233_v27 = vpop.permute.xlu1 %1403  ;;  %v3516_v49 = vld [vmem:[#allocation25_spill] sm:$0xff] }
 0x18d   : > { %v1137_v46 = vadd.f32 %v1129_v14, %v1121_v60  ;;  %v1116_v22 = vsel %vm345_vm0, %v3128_v41, %v1100_v19  ;;  %v1277_v21 = vadd.f32 0.0009, %v1269_v59  ;;  %v1278_v42 = vadd.f32 0.0009, %v1270_v24  ;;  %v3235_v50 = vpop.permute.xlu0 %1401  ;;  %v3519_v14 = vld [vmem:[#allocation26_spill] sm:$0xff] }
 0x18e   : > { %v1215_v57 = vadd.f32 %v1207_v40, %v1184_v34  ;;  %v1216_v0 = vadd.f32 %v1208_v4, %v1202_v52  ;;  %v1124_v12 = vsel %vm354_vm1, %v3128_v41, %v1100_v19  ;;  %v1132_v36 = vadd.f32 %v1116_v22, %v3516_v49  ;;  %v3518_v19 = vld [vmem:[#allocation35_spill] sm:$0xff] }
 0x18f   : > { %v1147_v47 = vrot.slane %v1137_v46, 1  ;;  %v1163_v7 = vrot.slane %v1137_v46, 7  ;;  %v1285_v55 = vmul.f32 %v1277_v21, %v3131_v5  ;;  %v1286_v51 = vmul.f32 %v1278_v42, %v3134_v58  ;;  %v3520_v42 = vld [vmem:[#allocation36_spill] sm:$0xff] }
 0x190   : > { %v1223_v37 = vmul.f32 0.11111111, %v1215_v57  ;;  %v1224_v48 = vmul.f32 0.11111111, %v1216_v0  ;;  %v1812_v8 = vpop.eup %1811  ;;  %1815 = vrcp.f32 %v3122_v6  ;;  %v1140_v32 = vadd.f32 %v1132_v36, %v1124_v12  ;;  %v3245_v43 = vpop.permute.xlu1 %1407  ;;  %v3521_v0 = vld [vmem:[#allocation37_spill] sm:$0xff] }
 0x191   : > { %v1165_v45 = vsel %vm395_vm3, %v1163_v7, %v1164_v29  ;;  %v1179_v39 = vsel %vm395_vm3, %v1147_v47, %v1163_v7  ;;  %v3249_v44 = vpop.permute.xlu0 %1405  ;;  %v1203_v53 = vsel %vm420_vm2, %v1185_v18, %v1164_v29  ;;  %v1186_v6 = vsel %vm420_vm2, %v1147_v47, %v1185_v18 }
 0x192   : > { %v1239_v41 = vsub.f32 %v1223_v37, %v3517_v31  ;;  %v1240_v10 = vsub.f32 %v1224_v48, %v3518_v19  ;;  %v1209_v63 = vadd.f32 %v1179_v39, %v1137_v46  ;;  %v1210_v5 = vadd.f32 %v1165_v45, %v1138_v28  ;;  %v3251_v58 = vpop.eup %1813  ;;  %v1825_v39 = vld [vmem:[%s2596_s4 + $0x8] sm:$0xff] }
 0x193   : > { %v1167_v2 = vrot.slane %v1140_v32, 7  ;;  %v1115_v54 = vsel %vm345_vm0, %v3138_v56, %v3206_v23  ;;  %v1187_v30 = vrot.slane %v1140_v32, 1  ;;  %v1334_v1 = vmul.f32 %v1810_v35, %v1285_v55 }
 0x194   : > { %v1271_v25 = vmul.f32 2.0, %v1239_v41  ;;  %v1272_v17 = vmul.f32 2.0, %v1240_v10  ;;  %v1217_v13 = vadd.f32 %v1209_v63, %v1186_v6  ;;  %v1218_v52 = vadd.f32 %v1210_v5, %v1203_v53  ;;  %v3259_v3 = vpop.permute.xlu1 %1411 }
 0x195   : > { %v1131_v28 = vadd.f32 %v1115_v54, %v3519_v14  ;;  %v1336_v34 = vmul.f32 %v1812_v8, %v1286_v51  ;;  %v1123_v40 = vsel %vm354_vm1, %v3138_v56, %v3206_v23  ;;  %v3264_v4 = vpop.permute.xlu0 %1409  ;;  %v1349_v46 = vsub.f32 1.0, %v1334_v1 }
 0x196   : > { %v1279_v60 = vadd.f32 0.0009, %v1271_v25  ;;  %v1280_v59 = vadd.f32 0.0009, %v1272_v17  ;;  %v1225_v24 = vmul.f32 0.11111111, %v1217_v13  ;;  %1817 = vrcp.f32 %v3166_v16 }
 0x197   : > { %v1226_v29 = vmul.f32 0.11111111, %v1218_v52  ;;  %v1139_v18 = vadd.f32 %v1131_v28, %v1123_v40  ;;  %v1350_v22 = vsub.f32 1.0, %v1336_v34  ;;  %1819 = vrcp.f32 %v3168_v9  ;;  %v3523_v17 = vld [vmem:[#allocation39_spill] sm:$0xff]  ;;  %v3525_v40 = vld [vmem:[#allocation41_spill] sm:$0xff] }
 0x198   : > { %v1287_v21 = vmul.f32 %v1279_v60, %v3141_v20  ;;  %v1288_v35 = vmul.f32 %v1280_v59, %v3144_v38  ;;  %v1241_v57 = vsub.f32 %v1225_v24, %v3520_v42  ;;  %v1424_v23 = vpop.permute.xlu1 %1423  ;;  %v1204_v49 = vsel %vm420_vm2, %v1187_v30, %v1167_v2  ;;  %v3524_v24 = vld [vmem:[#allocation40_spill] sm:$0xff] }
 0x199   : > { %v1242_v47 = vsub.f32 %v1226_v29, %v3521_v0  ;;  %v1148_v7 = vrot.slane %v1139_v18, 1  ;;  %v1166_v56 = vrot.slane %v1139_v18, 7  ;;  %v1446_v16 = vsel %vm345_vm0, %v3218_v15, %v1424_v23  ;;  %v1422_v20 = vpop.permute.xlu0 %1421 }
 0x19a   : > { %v1273_v12 = vmul.f32 2.0, %v1241_v57  ;;  %v1357_v36 = vmul.f32 0.5, %v1349_v46  ;;  %v1816_v55 = vpop.eup %1815  ;;  %v1358_v37 = vmul.f32 0.5, %v1350_v22  ;;  %v1462_v31 = vadd.f32 %v1825_v39, %v1446_v16 }
 0x19b   : > { %v1274_v38 = vmul.f32 2.0, %v1242_v47  ;;  %v1168_v51 = vsel %vm395_vm3, %v1166_v56, %v1167_v2  ;;  %v1180_v9 = vsel %vm395_vm3, %v1148_v7, %v1166_v56  ;;  %v1188_v19 = vsel %vm420_vm2, %v1148_v7, %v1187_v30 }
 0x19c   : > { %v1281_v48 = vadd.f32 0.0009, %v1273_v12  ;;  %v1211_v8 = vadd.f32 %v1180_v9, %v1139_v18  ;;  %v1212_v45 = vadd.f32 %v1168_v51, %v1140_v32  ;;  %v1454_v10 = vsel %vm354_vm1, %v3218_v15, %v1424_v23  ;;  %v1428_v54 = vpop.permute.xlu1 %1427  ;;  %v3522_v32 = vld [vmem:[#allocation38_spill] sm:$0xff] }
 0x19d   : > { %v1282_v41 = vadd.f32 0.0009, %v1274_v38  ;;  %v1445_v63 = vsel %vm345_vm0, %v3224_v61, %v1422_v20  ;;  %v1470_v2 = vadd.f32 %v1462_v31, %v1454_v10  ;;  %v1267_v25 = vadd.f32 0.0001, %v3522_v32  ;;  %v1426_v47 = vpop.permute.xlu0 %1425  ;;  %v1828_v10 = vld [vmem:[%s2596_s4 + $0x10] sm:$0xff] }
 0x19e   : > { %v3284_v5 = vmul.f32 %v1281_v48, %v3147_v11  ;;  %v1219_v53 = vadd.f32 %v1211_v8, %v1188_v19  ;;  %v1220_v6 = vadd.f32 %v1212_v45, %v1204_v49  ;;  %v1268_v13 = vadd.f32 0.0001, %v3523_v17  ;;  %v1826_v11 = vld [vmem:[%s2596_s4] sm:$0xff] }
 0x19f   : > { %1821 = vrcp.f32 %v3202_v62  ;;  %v3290_v52 = vmul.f32 %v1282_v41, %v3209_v33  ;;  %v1365_v14 = vmax.f32 %v1357_v36, 0.0  ;;  %v1366_v28 = vmax.f32 %v1358_v37, 0.0 }
 0x1a0   : > { %v1227_v15 = vmul.f32 0.11111111, %v1219_v53  ;;  %v1228_v30 = vmul.f32 0.11111111, %v1220_v6  ;;  %1823 = vrcp.f32 %v3204_v26  ;;  %v1461_v1 = vadd.f32 %v1826_v11, %v1445_v63  ;;  %v1818_v59 = vpop.eup %1817  ;;  %v1827_v26 = vld [vmem:[%s2596_s4 + $0x18] sm:$0xff]  ;;  %v1432_v37 = vpop.permute.xlu1 %1431 }
 0x1a1   : > { %v1448_v34 = vsel %vm345_vm0, %v3233_v27, %v1428_v54  ;;  %v1338_v60 = vmul.f32 %v3251_v58, %v1287_v21  ;;  %v1494_v29 = vrot.slane %v1470_v2, 7  ;;  %v1453_v18 = vsel %vm354_vm1, %v3224_v61, %v1422_v20  ;;  %v1820_v46 = vpop.eup %1819 }
 0x1a2   : > { %v1243_v62 = vsub.f32 %v1227_v15, %v3524_v24  ;;  %v1244_v33 = vsub.f32 %v1228_v30, %v3525_v40  ;;  %v1517_v22 = vrot.slane %v1470_v2, 1  ;;  %v1469_v42 = vadd.f32 %v1461_v1, %v1453_v18 }
 0x1a3   : > { %v1464_v57 = vadd.f32 %v1827_v26, %v1448_v34  ;;  %v1340_v0 = vmul.f32 %v1816_v55, %v1288_v35  ;;  %v1373_v23 = vmin.f32 %v1365_v14, 1.0  ;;  %v1374_v58 = vmin.f32 %v1366_v28, 1.0  ;;  %v1430_v14 = vpop.permute.xlu0 %1429 }
 0x1a4   : > { %v1275_v7 = vmul.f32 2.0, %v1243_v62  ;;  %v1276_v56 = vmul.f32 2.0, %v1244_v33  ;;  %v1481_v21 = vrot.slane %v1469_v42, 1  ;;  %v1493_v12 = vrot.slane %v1469_v42, 7 }
 0x1a5   : > { %v1351_v49 = vsub.f32 1.0, %v1338_v60  ;;  %v1352_v16 = vsub.f32 1.0, %v1340_v0  ;;  %v1456_v61 = vsel %vm354_vm1, %v3233_v27, %v1428_v54  ;;  %v1447_v20 = vsel %vm345_vm0, %v3235_v50, %v1426_v47 }
 0x1a6   : > { %v1283_v36 = vadd.f32 0.0009, %v1275_v7  ;;  %v1284_v38 = vadd.f32 0.0009, %v1276_v56  ;;  %v1537_v35 = vsel %vm420_vm2, %v1517_v22, %v1494_v29  ;;  %v1495_v55 = vsel %vm395_vm3, %v1493_v12, %v1494_v29  ;;  %v1830_v7 = vld [vmem:[%s2596_s4 + $0x20] sm:$0xff] }
 0x1a7   : > { %v1513_v51 = vsel %vm395_vm3, %v1481_v21, %v1493_v12  ;;  %v1472_v9 = vadd.f32 %v1464_v57, %v1456_v61  ;;  %v1542_v39 = vadd.f32 %v1495_v55, %v1470_v2  ;;  %v1518_v27 = vsel %vm420_vm2, %v1481_v21, %v1517_v22  ;;  %v1829_v2 = vld [vmem:[%s2596_s4 + $0x28] sm:$0xff] }
 0x1a8   : > { %v1291_v48 = vmul.f32 %v1283_v36, %v1267_v25  ;;  %v3309_v8 = vmul.f32 %v1284_v38, %v1268_v13  ;;  %v1541_v45 = vadd.f32 %v1513_v51, %v1469_v42  ;;  %v1359_v41 = vmul.f32 0.5, %v1351_v49 }
 0x1a9   : > { %v1822_v31 = vpop.eup %1821  ;;  %v1360_v19 = vmul.f32 0.5, %v1352_v16  ;;  %v1463_v63 = vadd.f32 %v1828_v10, %v1447_v20  ;;  %v1550_v6 = vadd.f32 %v1542_v39, %v1537_v35  ;;  %v1455_v54 = vsel %vm354_vm1, %v3235_v50, %v1426_v47 }
 0x1aa   : > { %v1549_v53 = vadd.f32 %v1541_v45, %v1518_v27  ;;  %v1450_v32 = vsel %vm345_vm0, %v3245_v43, %v1432_v37  ;;  %v1824_v25 = vpop.eup %1823  ;;  %v1497_v17 = vrot.slane %v1472_v9, 7  ;;  %v1519_v13 = vrot.slane %v1472_v9, 1  ;;  %v1831_v45 = vld [vmem:[%s2596_s4 + $0x38] sm:$0xff] }
 0x1ab   : > { %v1471_v15 = vadd.f32 %v1463_v63, %v1455_v54  ;;  %v1466_v30 = vadd.f32 %v1829_v2, %v1450_v32  ;;  %v1558_v11 = vmul.f32 0.11111111, %v1550_v6  ;;  %v1342_v1 = vmul.f32 %v1818_v59, %v3284_v5 }
 0x1ac   : > { %v1557_v28 = vmul.f32 0.11111111, %v1549_v53  ;;  %v1344_v34 = vmul.f32 %v1820_v46, %v3290_v52  ;;  %v1367_v60 = vmax.f32 %v1359_v41, 0.0  ;;  %v1368_v24 = vmax.f32 %v1360_v19, 0.0  ;;  %v1436_v52 = vpop.permute.xlu1 %1435  ;;  %v1434_v19 = vpop.permute.xlu0 %1433 }
 0x1ad   : > { %v1482_v50 = vrot.slane %v1471_v15, 1  ;;  %v1496_v62 = vrot.slane %v1471_v15, 7  ;;  %v1566_v33 = vmul.f32 %v1558_v11, %v1374_v58  ;;  %v1458_v29 = vsel %vm354_vm1, %v3245_v43, %v1432_v37 }
 0x1ae   : > { %v1565_v40 = vmul.f32 %v1557_v28, %v1373_v23  ;;  %v1449_v18 = vsel %vm345_vm0, %v3249_v44, %v1430_v14  ;;  %v1474_v5 = vadd.f32 %v1466_v30, %v1458_v29  ;;  %v1353_v59 = vsub.f32 1.0, %v1342_v1  ;;  %v1832_v28 = vld [vmem:[%s2596_s4 + $0x30] sm:$0xff] }
 0x1af   : > { %v1498_v22 = vsel %vm395_vm3, %v1496_v62, %v1497_v17  ;;  %v1514_v42 = vsel %vm395_vm3, %v1482_v50, %v1496_v62  ;;  %1575 = vst.msk [vmem:[%s3327_s11 + $0x8] sm:$0xff] %vm1573_vm4, %v1566_v33  ;;  %v1354_v26 = vsub.f32 1.0, %v1344_v34  ;;  %v1538_v57 = vsel %vm420_vm2, %v1519_v13, %v1497_v17 }
 0x1b0   : > { %1574 = vst.msk [vmem:[%s3327_s11] sm:$0xff] %vm1573_vm4, %v1565_v40  ;;  %v1543_v43 = vadd.f32 %v1514_v42, %v1471_v15  ;;  %v1544_v46 = vadd.f32 %v1498_v22, %v1472_v9  ;;  %v1375_v0 = vmin.f32 %v1367_v60, 1.0  ;;  %v1520_v47 = vsel %vm420_vm2, %v1482_v50, %v1519_v13 }
 0x1b1   : > { %v1465_v56 = vadd.f32 %v1830_v7, %v1449_v18  ;;  %v1457_v21 = vsel %vm354_vm1, %v3249_v44, %v1430_v14  ;;  %v1452_v12 = vsel %vm345_vm0, %v3259_v3, %v1436_v52  ;;  %v1376_v49 = vmin.f32 %v1368_v24, 1.0 }
 0x1b2   : > { %v1551_v23 = vadd.f32 %v1543_v43, %v1520_v47  ;;  %v1552_v58 = vadd.f32 %v1544_v46, %v1538_v57  ;;  %v1500_v16 = vrot.slane %v1474_v5, 7  ;;  %v1361_v36 = vmul.f32 0.5, %v1353_v59 }
 0x1b3   : > { %v1473_v38 = vadd.f32 %v1465_v56, %v1457_v21  ;;  %v1362_v35 = vmul.f32 0.5, %v1354_v26  ;;  %v1346_v55 = vmul.f32 %v1822_v31, %v1291_v48  ;;  %v1521_v51 = vrot.slane %v1474_v5, 1 }
 0x1b4   : > { %v1559_v61 = vmul.f32 0.11111111, %v1551_v23  ;;  %v1560_v20 = vmul.f32 0.11111111, %v1552_v58  ;;  %v1468_v39 = vadd.f32 %v1831_v45, %v1452_v12  ;;  %v1348_v41 = vmul.f32 %v1824_v25, %v3309_v8 }
 0x1b5   : > { %v1483_v9 = vrot.slane %v1473_v38, 1  ;;  %v1499_v37 = vrot.slane %v1473_v38, 7  ;;  %v1369_v10 = vmax.f32 %v1361_v36, 0.0  ;;  %v1370_v48 = vmax.f32 %v1362_v35, 0.0 }
 0x1b6   : > { %v1567_v27 = vmul.f32 %v1559_v61, %v1375_v0  ;;  %v1568_v44 = vmul.f32 %v1560_v20, %v1376_v49  ;;  %v1460_v54 = vsel %vm354_vm1, %v3259_v3, %v1436_v52  ;;  %v1539_v32 = vsel %vm420_vm2, %v1521_v51, %v1500_v16 }
 0x1b7   : > { %v1501_v63 = vsel %vm395_vm3, %v1499_v37, %v1500_v16  ;;  %v1515_v53 = vsel %vm395_vm3, %v1483_v9, %v1499_v37  ;;  %v1522_v8 = vsel %vm420_vm2, %v1483_v9, %v1521_v51  ;;  %v1476_v25 = vadd.f32 %v1468_v39, %v1460_v54 }
 0x1b8   : > { %1576 = vst.msk [vmem:[%s3327_s11 + $0x10] sm:$0xff] %vm1573_vm4, %v1567_v27  ;;  %1577 = vst.msk [vmem:[%s3327_s11 + $0x18] sm:$0xff] %vm1573_vm4, %v1568_v44  ;;  %v1545_v31 = vadd.f32 %v1515_v53, %v1473_v38  ;;  %v1546_v6 = vadd.f32 %v1501_v63, %v1474_v5  ;;  %v1451_v17 = vsel %vm345_vm0, %v3264_v4, %v1434_v19  ;;  %v1355_v2 = vsub.f32 1.0, %v1346_v55 }
 0x1b9   : > { %v1356_v30 = vsub.f32 1.0, %v1348_v41  ;;  %v1377_v14 = vmin.f32 %v1369_v10, 1.0  ;;  %v1467_v11 = vadd.f32 %v1832_v28, %v1451_v17  ;;  %v1378_v1 = vmin.f32 %v1370_v48, 1.0 }
 0x1ba   : > { %v1553_v13 = vadd.f32 %v1545_v31, %v1522_v8  ;;  %v1554_v15 = vadd.f32 %v1546_v6, %v1539_v32  ;;  %v1459_v60 = vsel %vm354_vm1, %v3264_v4, %v1434_v19  ;;  %v1503_v24 = vrot.slane %v1476_v25, 7 }
 0x1bb   : > { %v1475_v50 = vadd.f32 %v1467_v11, %v1459_v60  ;;  %v1363_v33 = vmul.f32 0.5, %v1355_v2  ;;  %v1364_v29 = vmul.f32 0.5, %v1356_v30  ;;  %v1523_v18 = vrot.slane %v1476_v25, 1 }
 0x1bc   : > { %v1561_v34 = vmul.f32 0.11111111, %v1553_v13  ;;  %v1562_v3 = vmul.f32 0.11111111, %v1554_v15 }
 0x1bd   : > { %v1484_v22 = vrot.slane %v1475_v50, 1  ;;  %v1502_v42 = vrot.slane %v1475_v50, 7  ;;  %v1371_v4 = vmax.f32 %v1363_v33, 0.0  ;;  %v1372_v52 = vmax.f32 %v1364_v29, 0.0 }
 0x1be   : > { %v1569_v62 = vmul.f32 %v1561_v34, %v1377_v14  ;;  %v1570_v40 = vmul.f32 %v1562_v3, %v1378_v1  ;;  %v1540_v26 = vsel %vm420_vm2, %v1523_v18, %v1503_v24 }
 0x1bf   : > { %v1504_v5 = vsel %vm395_vm3, %v1502_v42, %v1503_v24  ;;  %v1516_v59 = vsel %vm395_vm3, %v1484_v22, %v1502_v42  ;;  %v1524_v57 = vsel %vm420_vm2, %v1484_v22, %v1523_v18  ;;  %v1379_v7 = vmin.f32 %v1371_v4, 1.0 }
 0x1c0   : > { %1578 = vst.msk [vmem:[%s3327_s11 + $0x20] sm:$0xff] %vm1573_vm4, %v1569_v62  ;;  %1579 = vst.msk [vmem:[%s3327_s11 + $0x28] sm:$0xff] %vm1573_vm4, %v1570_v40  ;;  %v1547_v43 = vadd.f32 %v1516_v59, %v1475_v50  ;;  %v1548_v46 = vadd.f32 %v1504_v5, %v1476_v25  ;;  %v1380_v56 = vmin.f32 %v1372_v52, 1.0 }
 0x1c2   : > { %v1555_v0 = vadd.f32 %v1547_v43, %v1524_v57  ;;  %v1556_v47 = vadd.f32 %v1548_v46, %v1540_v26 }
 0x1c4   : > { %v1563_v23 = vmul.f32 0.11111111, %v1555_v0  ;;  %v1564_v58 = vmul.f32 0.11111111, %v1556_v47 }
 0x1c6   : > { %v1571_v21 = vmul.f32 %v1563_v23, %v1379_v7  ;;  %v1572_v12 = vmul.f32 %v1564_v58, %v1380_v56 }
 0x1c8   : > { %1580 = vst.msk [vmem:[%s3327_s11 + $0x30] sm:$0xff] %vm1573_vm4, %v1571_v21  ;;  %1581 = vst.msk [vmem:[%s3327_s11 + $0x38] sm:$0xff] %vm1573_vm4, %v1572_v12 }
 0x1c9   : > { %1936 = shalt.err (!%p1933_p10)
}
 0x1ca   : > { %s1937_s28 = scalar_lea.hbm %s3370_s27, 1024  ;;  %s1941_s29 = scalar_lea.hbm %s3423_s3, 2048 }
 0x1cb   : > { %p1938_p11 = scmp.ne.s32.totalorder %s3370_s27, %s1937_s28  ;;  %p1942_p5 = scmp.lt.u32.totalorder %s3370_s27, %s3423_s3 }
 0x1cc   : > { %p1943_p2 = scmp.lt.u32.totalorder %s1941_s29, %s1937_s28  ;;  %p1945_p13 = scmp.lt.u32.totalorder %s1937_s28, %s3370_s27 }
 0x1cd   : > { %p1939_p4 = pnand %p1938_p11, %p3526_p7 }
 0x1ce   : > { %p1944_p1 = por %p1943_p2, %p1942_p5 }
 0x1cf   : > { %p1940_p3 = pneg %p1939_p4 }
 0x1d0   : > { %p1946_p6 = por %p1945_p13, %p1944_p1 }
 0x1d2   : > { %p1947_p9 = pnand %p1946_p6, %p1940_p3 }
 0x1d4   : > { %1950 = shalt.err (!%p1947_p9)
}
 0x1d5   : > { %s2003_s22 = smov 128   ;;  %s2004_s4 = smov 8  }
 0x1d6   : > { %1753 = dma.vmem_to_hbm [thread:$0]  (%p3526_p7), %s3372_s6, 1024, %s3370_s27, %s1583_s16, %s2003_s22, %s2003_s22, %s2004_s4  }
 0x1d7 PF: > { %s1612_s11 = sand.u32 1, %s1981_s12   ;;  %p3527_p12 = scmp.ne.s32.totalorder %s3448_s24, 0 }
 0x1d8   : > { %p3528_p0 = scmp.ge.s32.totalorder %s1993_s15, 2  ;;  %s1613_s30 = scalar_lea.sflag [#allocation4], %s1612_s11 }
 0x1da   : > { %p1766_p8 = pnand %p3528_p0, %p3527_p12 }
 0x1dc   : > { %1976 = dma.done.wait (!%p1766_p8), %s1613_s30, 1024  }
 0x1dd   : > { %1978 = vsyncadd (!%p1766_p8), %s1613_s30, 4294966272  ;;  %p19_p10 = scmp.ge.s32.totalorder %s2050_s18, 4   ;;  %s3529_s12 = smov %s1985_s13 }
 0x1de   : > { %s3530_s13 = smov %s1989_s14  ;;  %s3531_s14 = smov %s2062_s21 }
 0x1df   : > { %s3532_s15 = smov %s2050_s18  ;;  %21 = sbr.rel (!%p19_p10) target bundleno = 9 (0x9), region = 101 }
 0x1e6   :  { %1618 = vsyncpa [#allocation3], 1 }
 0x1e7   :  { %1620 = vsyncpa [#allocation3 + $0x1], 1 }
 0x1e8   :  { %1621 = vsyncpa [#allocation6], 1 }
 0x1e9   :  { %1623 = vsyncpa [#allocation6 + $0x1], 1 }
 0x1ea   :  { %1624 = vsyncpa [#allocation4], 1 }
 0x1eb   :  { %1626 = vsyncpa [#allocation4 + $0x1], 1 }

</bundles_post_ra>
